<compile_context>
chip_gen: v6e
topology: v6e:2x2x1
jax: 0.10.0
libtpu: 0.0.40
codegen_flags: <defaults>
</compile_context>

<pallas_src>
import math

import jax
import jax.numpy as jnp
import numpy as np
from jax.experimental import pallas as pl
from jax.experimental.pallas import tpu as pltpu

TAU = 2.0  # LIF default


# -----------------------------------------------------------------------------
# Fused Pallas kernel (factory closes over the static network structure)
# -----------------------------------------------------------------------------
def _make_fused_kernel(n_blocks, T, B):
    def kernel(*refs):
        pos = 0
        x_ref = refs[pos]; pos += 1
        blk_refs = []
        for _ in range(n_blocks):
            blk_refs.append(refs[pos:pos + 5]); pos += 5
        wfc_ref, bfc_ref = refs[pos], refs[pos + 1]; pos += 2
        spk_ref, psp_ref = refs[pos], refs[pos + 1]; pos += 2
        act_ref = refs[pos]                       # VMEM scratch (T*B, n_max) f32

        x = x_ref[...]                            # (T*B, width) bf16, time-major

        for wih_ref, bih_ref, whh_ref, bhh_ref, sign_ref in blk_refs:
            n_out = wih_ref.shape[1]
            # Hoisted feed-forward synapse: one MXU call for all T*B rows
            # (this block's input does not depend on its own recurrence).
            h_ih = jnp.dot(x, wih_ref[...],
                           preferred_element_type=jnp.float32) + bih_ref[...]
            w_hh = whh_ref[...]                   # (n_out, n_out) bf16, pre-transposed
            b_hh = bhh_ref[...]                   # (1, n_out) f32
            sign = sign_ref[...]                  # (1, n_out) f32

            u = jnp.zeros((B, n_out), jnp.float32)
            h_last = None                         # torch: hh branch skipped at t == 0
            # T is small and static -> fully unrolled time loop; state lives in
            # vregs, per-step work is just the tiny hh matmul + LIF update.
            for t in range(T):
                h = h_ih[t * B:(t + 1) * B, :]
                if h_last is not None:
                    h = h + jnp.dot(h_last, w_hh,
                                    preferred_element_type=jnp.float32) + b_hh
                u = u / TAU + h
                s = (u - 1.0 >= 0.0).astype(jnp.float32)
                u = u * (1.0 - s)
                s_signed = s * sign               # excitatory / inhibitory sign
                h_last = s_signed.astype(jnp.bfloat16)
                act_ref[t * B:(t + 1) * B, :n_out] = s_signed

            # Full signed spike tensor feeds the next layer; inhibitory columns
            # hit zero weight columns (excitatory slice folded into W_ih).
            x = act_ref[:, :n_out].astype(jnp.bfloat16)

        # fc_out (one batched matmul over all T*B rows) + output LIF.
        h_fc = jnp.dot(x, wfc_ref[...],
                       preferred_element_type=jnp.float32) + bfc_ref[...]
        psp_ref[...] = h_fc                       # single store of all psps
        C = h_fc.shape[1]
        u = jnp.zeros((B, C), jnp.float32)
        for t in range(T):
            h = h_fc[t * B:(t + 1) * B, :]
            u = u / TAU + h
            s = (u - 1.0 >= 0.0).astype(jnp.float32)
            u = u * (1.0 - s)
            spk_ref[t * B:(t + 1) * B, :] = s

    return kernel


# -----------------------------------------------------------------------------
# Wrapper
# -----------------------------------------------------------------------------
def _effective_weight(w, m, in_width):
    """|W| * mask, zero-padded on the input dim to `in_width`, transposed, bf16."""
    n_out, n_pre = w.shape
    w_eff = jnp.abs(w) * m
    if in_width > n_pre:
        w_eff = jnp.concatenate(
            [w_eff, jnp.zeros((n_out, in_width - n_pre), w_eff.dtype)], axis=1)
    return w_eff.T.astype(jnp.bfloat16)           # (in_width, n_out)


def eidrsnn_forward(x_btf, blocks, fc):
    """x_btf: (B, T, F).  Returns (spikes, psps), each (B, T, num_classes)."""
    B, T, F = x_btf.shape

    # Fold abs + mask + transpose + excitatory-column padding, once per forward.
    prep = []
    width = F
    for p in blocks:
        n_out = p["w_ih"].shape[0]
        prep.append((_effective_weight(p["w_ih"], p["m_ih"], width), p["b_ih"],
                     _effective_weight(p["w_hh"], p["m_hh"], n_out), p["b_hh"],
                     p["sign"]))
        width = n_out
    w_fc = _effective_weight(fc["w"], fc["m"], width)
    C = w_fc.shape[1]
    n_max = max(blk[0].shape[1] for blk in prep)

    # Single tiny time-major flatten for the whole forward (so the hoisted
    # per-block matmuls run over all T*B rows at once).  Binary input -> bf16 exact.
    x2d = jnp.transpose(x_btf, (1, 0, 2)).reshape(T * B, F).astype(jnp.bfloat16)

    flat_in = [x2d]
    for blk in prep:
        flat_in.extend(blk)
    flat_in.extend([w_fc, fc["b"]])

    full = lambda i: (0, 0)                       # every operand is a full 2-D block
    in_specs = [pl.BlockSpec(a.shape, full) for a in flat_in]

    spk2d, psp2d = pl.pallas_call(
        _make_fused_kernel(len(blocks), T, B),
        out_shape=(jax.ShapeDtypeStruct((T * B, C), jnp.float32),
                   jax.ShapeDtypeStruct((T * B, C), jnp.float32)),
        grid_spec=pltpu.PrefetchScalarGridSpec(
            num_scalar_prefetch=0,
            grid=(1,),
            in_specs=in_specs,
            out_specs=[pl.BlockSpec((T * B, C), full),
                       pl.BlockSpec((T * B, C), full)],
            scratch_shapes=[pltpu.VMEM((T * B, n_max), jnp.float32)],
        ),
        compiler_params=pltpu.CompilerParams(dimension_semantics=("arbitrary",)),
    )(*flat_in)

    spk = jnp.transpose(spk2d.reshape(T, B, C), (1, 0, 2))
    psp = jnp.transpose(psp2d.reshape(T, B, C), (1, 0, 2))
    return spk, psp


# -----------------------------------------------------------------------------
# Deterministic synthetic parameters (shapes match the torch __init__)
# -----------------------------------------------------------------------------
def _linear_params(key, n_out, n_in, sparsity):
    kw, kb = jax.random.split(key)
    bound = 1.0 / math.sqrt(n_in)
    w = jax.random.normal(kw, (n_out, n_in), jnp.float32) * bound
    b = jax.random.uniform(kb, (1, n_out), jnp.float32, -bound, bound)
    thr = jnp.percentile(jnp.abs(w), 100.0 * (1.0 - sparsity))
    m = (jnp.abs(w) >= thr).astype(jnp.float32)
    return w, b, m


def make_params(key, layers, percent, num_classes, sparsity):
    blocks = []
    n_pre = int(layers[0] * percent[0])
    for i in range(1, len(layers)):
        key, k1, k2 = jax.random.split(key, 3)
        n_out = layers[i]
        n_exc = int(n_out * percent[i])
        w_ih, b_ih, m_ih = _linear_params(k1, n_out, n_pre, sparsity)
        w_hh, b_hh, m_hh = _linear_params(k2, n_out, n_out, sparsity)
        sign = jnp.ones((1, n_out), jnp.float32).at[:, n_exc:].set(-1.0)
        blocks.append(dict(w_ih=w_ih, b_ih=b_ih, m_ih=m_ih,
                           w_hh=w_hh, b_hh=b_hh, m_hh=m_hh,
                           sign=sign, n_exc=n_exc))
        n_pre = n_exc
    key, kf = jax.random.split(key)
    w, b, m = _linear_params(kf, num_classes, n_pre, sparsity)
    return blocks, dict(w=w, b=b, m=m)


# -----------------------------------------------------------------------------
# Pure-JAX reference (mirrors the torch forward; same bf16 matmul-operand /
# f32 accumulation dtype policy as the kernel)
# -----------------------------------------------------------------------------
def ref_forward(x_btf, blocks, fc):
    B, T, _ = x_btf.shape
    w_ih_eff = [(jnp.abs(p["w_ih"]) * p["m_ih"]).astype(jnp.bfloat16) for p in blocks]
    w_hh_eff = [(jnp.abs(p["w_hh"]) * p["m_hh"]).astype(jnp.bfloat16) for p in blocks]
    w_fc_eff = (jnp.abs(fc["w"]) * fc["m"]).astype(jnp.bfloat16)

    u_blk = [jnp.zeros((B, p["w_ih"].shape[0]), jnp.float32) for p in blocks]
    h_blk = [None] * len(blocks)
    u_fc = jnp.zeros((B, fc["w"].shape[0]), jnp.float32)
    outs, psps = [], []
    for t in range(T):
        x = x_btf[:, t].astype(jnp.bfloat16)
        for i, p in enumerate(blocks):
            h = jnp.dot(x, w_ih_eff[i].T,
                        preferred_element_type=jnp.float32) + p["b_ih"]
            if h_blk[i] is not None:
                h = h + jnp.dot(h_blk[i], w_hh_eff[i].T,
                                preferred_element_type=jnp.float32) + p["b_hh"]
            u = u_blk[i] / TAU + h
            s = (u - 1.0 >= 0.0).astype(jnp.float32)
            u_blk[i] = u * (1.0 - s)
            s_signed = s * p["sign"]
            h_blk[i] = s_signed.astype(jnp.bfloat16)
            x = h_blk[i][:, :p["n_exc"]]
        h = jnp.dot(x, w_fc_eff.T, preferred_element_type=jnp.float32) + fc["b"]
        u = u_fc / TAU + h
        s = (u - 1.0 >= 0.0).astype(jnp.float32)
        u_fc = u * (1.0 - s)
        outs.append(s)
        psps.append(h)
    return jnp.stack(outs, axis=1), jnp.stack(psps, axis=1)


# -----------------------------------------------------------------------------
if __name__ == "__main__":
    # eiDRSNN(T=8, t_max=1, layers=[40, 32, 32], percent=[0.8, 0.75, 0.5],
    #         num_classes=10, sparsity=0.3, constraint='abs')
    T, B = 8, 2
    layers = [40, 32, 32]
    percent = [0.8, 0.75, 0.5]
    num_classes = 10
    sparsity = 0.3

    key = jax.random.PRNGKey(0)
    kp, kx = jax.random.split(key)
    blocks, fc = make_params(kp, layers, percent, num_classes, sparsity)

    n_in = int(layers[0] * percent[0])                       # = 32
    x = (jax.random.uniform(kx, (B, T, n_in)) < 0.3).astype(jnp.float32)

    forward = jax.jit(eidrsnn_forward)
    out, psp = forward(x, blocks, fc)
    out = jax.block_until_ready(out)
    psp = jax.block_until_ready(psp)
    assert out.shape == (B, T, num_classes) and psp.shape == (B, T, num_classes)

    ref_out, ref_psp = ref_forward(x, blocks, fc)
    np.testing.assert_allclose(np.asarray(psp), np.asarray(ref_psp),
                               rtol=1e-4, atol=1e-4)
    np.testing.assert_allclose(np.asarray(out), np.asarray(ref_out),
                               rtol=0, atol=1e-4)

    print("KERNEL_OK")
</pallas_src>

<mosaic_0001>
module attributes {stable_mosaic.version = 11 : i64} {
  func.func @kernel(%arg0: i32, %arg1: memref<16x32xbf16, #tpu.memory_space<vmem>>, %arg2: memref<32x32xbf16, #tpu.memory_space<vmem>>, %arg3: memref<1x32xf32, #tpu.memory_space<vmem>>, %arg4: memref<32x32xbf16, #tpu.memory_space<vmem>>, %arg5: memref<1x32xf32, #tpu.memory_space<vmem>>, %arg6: memref<1x32xf32, #tpu.memory_space<vmem>>, %arg7: memref<32x32xbf16, #tpu.memory_space<vmem>>, %arg8: memref<1x32xf32, #tpu.memory_space<vmem>>, %arg9: memref<32x32xbf16, #tpu.memory_space<vmem>>, %arg10: memref<1x32xf32, #tpu.memory_space<vmem>>, %arg11: memref<1x32xf32, #tpu.memory_space<vmem>>, %arg12: memref<32x10xbf16, #tpu.memory_space<vmem>>, %arg13: memref<1x10xf32, #tpu.memory_space<vmem>>, %arg14: memref<16x10xf32, #tpu.memory_space<vmem>>, %arg15: memref<16x10xf32, #tpu.memory_space<vmem>>, %arg16: memref<16x32xf32, #tpu.memory_space<vmem>>) attributes {dimension_semantics = [#tpu.dimension_semantics<arbitrary>], iteration_bounds = array<i64: 1>, scalar_prefetch = 0 : i64, scratch_operands = 1 : i64, tpu.core_type = #tpu.core_type<tc>, window_params = [{pipeline_mode = #tpu.pipeline_mode<synchronous>, transform_indices = @transform_0, window_bounds = array<i64: 16, 32>}, {pipeline_mode = #tpu.pipeline_mode<synchronous>, transform_indices = @transform_1, window_bounds = array<i64: 32, 32>}, {pipeline_mode = #tpu.pipeline_mode<synchronous>, transform_indices = @transform_2, window_bounds = array<i64: 1, 32>}, {pipeline_mode = #tpu.pipeline_mode<synchronous>, transform_indices = @transform_3, window_bounds = array<i64: 32, 32>}, {pipeline_mode = #tpu.pipeline_mode<synchronous>, transform_indices = @transform_4, window_bounds = array<i64: 1, 32>}, {pipeline_mode = #tpu.pipeline_mode<synchronous>, transform_indices = @transform_5, window_bounds = array<i64: 1, 32>}, {pipeline_mode = #tpu.pipeline_mode<synchronous>, transform_indices = @transform_6, window_bounds = array<i64: 32, 32>}, {pipeline_mode = #tpu.pipeline_mode<synchronous>, transform_indices = @transform_7, window_bounds = array<i64: 1, 32>}, {pipeline_mode = #tpu.pipeline_mode<synchronous>, transform_indices = @transform_8, window_bounds = array<i64: 32, 32>}, {pipeline_mode = #tpu.pipeline_mode<synchronous>, transform_indices = @transform_9, window_bounds = array<i64: 1, 32>}, {pipeline_mode = #tpu.pipeline_mode<synchronous>, transform_indices = @transform_10, window_bounds = array<i64: 1, 32>}, {pipeline_mode = #tpu.pipeline_mode<synchronous>, transform_indices = @transform_11, window_bounds = array<i64: 32, 10>}, {pipeline_mode = #tpu.pipeline_mode<synchronous>, transform_indices = @transform_12, window_bounds = array<i64: 1, 10>}, {pipeline_mode = #tpu.pipeline_mode<synchronous>, transform_indices = @transform_13, window_bounds = array<i64: 16, 10>}, {pipeline_mode = #tpu.pipeline_mode<synchronous>, transform_indices = @transform_14, window_bounds = array<i64: 16, 10>}]} {
    %c0 = arith.constant 0 : index
    %c0_0 = arith.constant 0 : index
    %0 = vector.load %arg1[%c0, %c0_0] : memref<16x32xbf16, #tpu.memory_space<vmem>>, vector<16x32xbf16>
    %c0_1 = arith.constant 0 : index
    %c0_2 = arith.constant 0 : index
    %1 = vector.load %arg2[%c0_1, %c0_2] : memref<32x32xbf16, #tpu.memory_space<vmem>>, vector<32x32xbf16>
    %cst = arith.constant dense<0.000000e+00> : vector<16x32xf32>
    %2 = tpu.matmul %0, %1, %cst {dimension_numbers = #tpu.dot_dimension_numbers<[1], [0], [0], [1], [0, 0, 1, 1], [], []>} : vector<16x32xbf16>, vector<32x32xbf16>, vector<16x32xf32> -> vector<16x32xf32>
    %c0_3 = arith.constant 0 : index
    %c0_4 = arith.constant 0 : index
    %3 = vector.load %arg3[%c0_3, %c0_4] : memref<1x32xf32, #tpu.memory_space<vmem>>, vector<1x32xf32>
    %4 = vector.broadcast %3 : vector<1x32xf32> to vector<16x32xf32>
    %5 = arith.addf %2, %4 : vector<16x32xf32>
    %c0_5 = arith.constant 0 : index
    %c0_6 = arith.constant 0 : index
    %6 = vector.load %arg4[%c0_5, %c0_6] : memref<32x32xbf16, #tpu.memory_space<vmem>>, vector<32x32xbf16>
    %c0_7 = arith.constant 0 : index
    %c0_8 = arith.constant 0 : index
    %7 = vector.load %arg5[%c0_7, %c0_8] : memref<1x32xf32, #tpu.memory_space<vmem>>, vector<1x32xf32>
    %c0_9 = arith.constant 0 : index
    %c0_10 = arith.constant 0 : index
    %8 = vector.load %arg6[%c0_9, %c0_10] : memref<1x32xf32, #tpu.memory_space<vmem>>, vector<1x32xf32>
    %cst_11 = arith.constant 0.000000e+00 : f32
    %9 = vector.broadcast %cst_11 : f32 to vector<2x32xf32>
    %10 = vector.extract_strided_slice %5 {offsets = [0, 0], sizes = [2, 32], strides = [1, 1]} : vector<16x32xf32> to vector<2x32xf32>
    %cst_12 = arith.constant 2.000000e+00 : f32
    %11 = vector.broadcast %cst_12 : f32 to vector<2x32xf32>
    %12 = arith.divf %9, %11 : vector<2x32xf32>
    %13 = arith.addf %12, %10 : vector<2x32xf32>
    %cst_13 = arith.constant 1.000000e+00 : f32
    %14 = vector.broadcast %cst_13 : f32 to vector<2x32xf32>
    %15 = arith.subf %13, %14 : vector<2x32xf32>
    %cst_14 = arith.constant 0.000000e+00 : f32
    %16 = vector.broadcast %cst_14 : f32 to vector<2x32xf32>
    %17 = arith.cmpf oge, %15, %16 : vector<2x32xf32>
    %18 = arith.extui %17 : vector<2x32xi1> to vector<2x32xi32>
    %19 = arith.sitofp %18 : vector<2x32xi32> to vector<2x32xf32>
    %cst_15 = arith.constant 1.000000e+00 : f32
    %20 = vector.broadcast %cst_15 : f32 to vector<2x32xf32>
    %21 = arith.subf %20, %19 : vector<2x32xf32>
    %22 = arith.mulf %13, %21 : vector<2x32xf32>
    %23 = vector.broadcast %8 : vector<1x32xf32> to vector<2x32xf32>
    %24 = arith.mulf %19, %23 : vector<2x32xf32>
    %25 = arith.truncf %24 : vector<2x32xf32> to vector<2x32xbf16>
    %c0_16 = arith.constant 0 : index
    %c0_17 = arith.constant 0 : index
    %26 = vector.load %arg16[%c0_16, %c0_17] : memref<16x32xf32, #tpu.memory_space<vmem>>, vector<2x32xf32>
    tpu.vector_store %arg16[%c0_16, %c0_17], %24 {strides = array<i32>} : memref<16x32xf32, #tpu.memory_space<vmem>>, vector<2x32xf32>,
    %27 = vector.extract_strided_slice %5 {offsets = [2, 0], sizes = [2, 32], strides = [1, 1]} : vector<16x32xf32> to vector<2x32xf32>
    %cst_18 = arith.constant dense<0.000000e+00> : vector<2x32xf32>
    %28 = tpu.matmul %25, %6, %cst_18 {dimension_numbers = #tpu.dot_dimension_numbers<[1], [0], [0], [1], [0, 0, 1, 1], [], []>} : vector<2x32xbf16>, vector<32x32xbf16>, vector<2x32xf32> -> vector<2x32xf32>
    %29 = arith.addf %27, %28 : vector<2x32xf32>
    %30 = vector.broadcast %7 : vector<1x32xf32> to vector<2x32xf32>
    %31 = arith.addf %29, %30 : vector<2x32xf32>
    %cst_19 = arith.constant 2.000000e+00 : f32
    %32 = vector.broadcast %cst_19 : f32 to vector<2x32xf32>
    %33 = arith.divf %22, %32 : vector<2x32xf32>
    %34 = arith.addf %33, %31 : vector<2x32xf32>
    %cst_20 = arith.constant 1.000000e+00 : f32
    %35 = vector.broadcast %cst_20 : f32 to vector<2x32xf32>
    %36 = arith.subf %34, %35 : vector<2x32xf32>
    %cst_21 = arith.constant 0.000000e+00 : f32
    %37 = vector.broadcast %cst_21 : f32 to vector<2x32xf32>
    %38 = arith.cmpf oge, %36, %37 : vector<2x32xf32>
    %39 = arith.extui %38 : vector<2x32xi1> to vector<2x32xi32>
    %40 = arith.sitofp %39 : vector<2x32xi32> to vector<2x32xf32>
    %cst_22 = arith.constant 1.000000e+00 : f32
    %41 = vector.broadcast %cst_22 : f32 to vector<2x32xf32>
    %42 = arith.subf %41, %40 : vector<2x32xf32>
    %43 = arith.mulf %34, %42 : vector<2x32xf32>
    %44 = vector.broadcast %8 : vector<1x32xf32> to vector<2x32xf32>
    %45 = arith.mulf %40, %44 : vector<2x32xf32>
    %46 = arith.truncf %45 : vector<2x32xf32> to vector<2x32xbf16>
    %c2 = arith.constant 2 : index
    %c0_23 = arith.constant 0 : index
    %47 = vector.load %arg16[%c2, %c0_23] : memref<16x32xf32, #tpu.memory_space<vmem>>, vector<2x32xf32>
    tpu.vector_store %arg16[%c2, %c0_23], %45 {strides = array<i32>} : memref<16x32xf32, #tpu.memory_space<vmem>>, vector<2x32xf32>,
    %48 = vector.extract_strided_slice %5 {offsets = [4, 0], sizes = [2, 32], strides = [1, 1]} : vector<16x32xf32> to vector<2x32xf32>
    %cst_24 = arith.constant dense<0.000000e+00> : vector<2x32xf32>
    %49 = tpu.matmul %46, %6, %cst_24 {dimension_numbers = #tpu.dot_dimension_numbers<[1], [0], [0], [1], [0, 0, 1, 1], [], []>} : vector<2x32xbf16>, vector<32x32xbf16>, vector<2x32xf32> -> vector<2x32xf32>
    %50 = arith.addf %48, %49 : vector<2x32xf32>
    %51 = vector.broadcast %7 : vector<1x32xf32> to vector<2x32xf32>
    %52 = arith.addf %50, %51 : vector<2x32xf32>
    %cst_25 = arith.constant 2.000000e+00 : f32
    %53 = vector.broadcast %cst_25 : f32 to vector<2x32xf32>
    %54 = arith.divf %43, %53 : vector<2x32xf32>
    %55 = arith.addf %54, %52 : vector<2x32xf32>
    %cst_26 = arith.constant 1.000000e+00 : f32
    %56 = vector.broadcast %cst_26 : f32 to vector<2x32xf32>
    %57 = arith.subf %55, %56 : vector<2x32xf32>
    %cst_27 = arith.constant 0.000000e+00 : f32
    %58 = vector.broadcast %cst_27 : f32 to vector<2x32xf32>
    %59 = arith.cmpf oge, %57, %58 : vector<2x32xf32>
    %60 = arith.extui %59 : vector<2x32xi1> to vector<2x32xi32>
    %61 = arith.sitofp %60 : vector<2x32xi32> to vector<2x32xf32>
    %cst_28 = arith.constant 1.000000e+00 : f32
    %62 = vector.broadcast %cst_28 : f32 to vector<2x32xf32>
    %63 = arith.subf %62, %61 : vector<2x32xf32>
    %64 = arith.mulf %55, %63 : vector<2x32xf32>
    %65 = vector.broadcast %8 : vector<1x32xf32> to vector<2x32xf32>
    %66 = arith.mulf %61, %65 : vector<2x32xf32>
    %67 = arith.truncf %66 : vector<2x32xf32> to vector<2x32xbf16>
    %c4 = arith.constant 4 : index
    %c0_29 = arith.constant 0 : index
    %68 = vector.load %arg16[%c4, %c0_29] : memref<16x32xf32, #tpu.memory_space<vmem>>, vector<2x32xf32>
    tpu.vector_store %arg16[%c4, %c0_29], %66 {strides = array<i32>} : memref<16x32xf32, #tpu.memory_space<vmem>>, vector<2x32xf32>,
    %69 = vector.extract_strided_slice %5 {offsets = [6, 0], sizes = [2, 32], strides = [1, 1]} : vector<16x32xf32> to vector<2x32xf32>
    %cst_30 = arith.constant dense<0.000000e+00> : vector<2x32xf32>
    %70 = tpu.matmul %67, %6, %cst_30 {dimension_numbers = #tpu.dot_dimension_numbers<[1], [0], [0], [1], [0, 0, 1, 1], [], []>} : vector<2x32xbf16>, vector<32x32xbf16>, vector<2x32xf32> -> vector<2x32xf32>
    %71 = arith.addf %69, %70 : vector<2x32xf32>
    %72 = vector.broadcast %7 : vector<1x32xf32> to vector<2x32xf32>
    %73 = arith.addf %71, %72 : vector<2x32xf32>
    %cst_31 = arith.constant 2.000000e+00 : f32
    %74 = vector.broadcast %cst_31 : f32 to vector<2x32xf32>
    %75 = arith.divf %64, %74 : vector<2x32xf32>
    %76 = arith.addf %75, %73 : vector<2x32xf32>
    %cst_32 = arith.constant 1.000000e+00 : f32
    %77 = vector.broadcast %cst_32 : f32 to vector<2x32xf32>
    %78 = arith.subf %76, %77 : vector<2x32xf32>
    %cst_33 = arith.constant 0.000000e+00 : f32
    %79 = vector.broadcast %cst_33 : f32 to vector<2x32xf32>
    %80 = arith.cmpf oge, %78, %79 : vector<2x32xf32>
    %81 = arith.extui %80 : vector<2x32xi1> to vector<2x32xi32>
    %82 = arith.sitofp %81 : vector<2x32xi32> to vector<2x32xf32>
    %cst_34 = arith.constant 1.000000e+00 : f32
    %83 = vector.broadcast %cst_34 : f32 to vector<2x32xf32>
    %84 = arith.subf %83, %82 : vector<2x32xf32>
    %85 = arith.mulf %76, %84 : vector<2x32xf32>
    %86 = vector.broadcast %8 : vector<1x32xf32> to vector<2x32xf32>
    %87 = arith.mulf %82, %86 : vector<2x32xf32>
    %88 = arith.truncf %87 : vector<2x32xf32> to vector<2x32xbf16>
    %c6 = arith.constant 6 : index
    %c0_35 = arith.constant 0 : index
    %89 = vector.load %arg16[%c6, %c0_35] : memref<16x32xf32, #tpu.memory_space<vmem>>, vector<2x32xf32>
    tpu.vector_store %arg16[%c6, %c0_35], %87 {strides = array<i32>} : memref<16x32xf32, #tpu.memory_space<vmem>>, vector<2x32xf32>,
    %90 = vector.extract_strided_slice %5 {offsets = [8, 0], sizes = [2, 32], strides = [1, 1]} : vector<16x32xf32> to vector<2x32xf32>
    %cst_36 = arith.constant dense<0.000000e+00> : vector<2x32xf32>
    %91 = tpu.matmul %88, %6, %cst_36 {dimension_numbers = #tpu.dot_dimension_numbers<[1], [0], [0], [1], [0, 0, 1, 1], [], []>} : vector<2x32xbf16>, vector<32x32xbf16>, vector<2x32xf32> -> vector<2x32xf32>
    %92 = arith.addf %90, %91 : vector<2x32xf32>
    %93 = vector.broadcast %7 : vector<1x32xf32> to vector<2x32xf32>
    %94 = arith.addf %92, %93 : vector<2x32xf32>
    %cst_37 = arith.constant 2.000000e+00 : f32
    %95 = vector.broadcast %cst_37 : f32 to vector<2x32xf32>
    %96 = arith.divf %85, %95 : vector<2x32xf32>
    %97 = arith.addf %96, %94 : vector<2x32xf32>
    %cst_38 = arith.constant 1.000000e+00 : f32
    %98 = vector.broadcast %cst_38 : f32 to vector<2x32xf32>
    %99 = arith.subf %97, %98 : vector<2x32xf32>
    %cst_39 = arith.constant 0.000000e+00 : f32
    %100 = vector.broadcast %cst_39 : f32 to vector<2x32xf32>
    %101 = arith.cmpf oge, %99, %100 : vector<2x32xf32>
    %102 = arith.extui %101 : vector<2x32xi1> to vector<2x32xi32>
    %103 = arith.sitofp %102 : vector<2x32xi32> to vector<2x32xf32>
    %cst_40 = arith.constant 1.000000e+00 : f32
    %104 = vector.broadcast %cst_40 : f32 to vector<2x32xf32>
    %105 = arith.subf %104, %103 : vector<2x32xf32>
    %106 = arith.mulf %97, %105 : vector<2x32xf32>
    %107 = vector.broadcast %8 : vector<1x32xf32> to vector<2x32xf32>
    %108 = arith.mulf %103, %107 : vector<2x32xf32>
    %109 = arith.truncf %108 : vector<2x32xf32> to vector<2x32xbf16>
    %c8 = arith.constant 8 : index
    %c0_41 = arith.constant 0 : index
    %110 = vector.load %arg16[%c8, %c0_41] : memref<16x32xf32, #tpu.memory_space<vmem>>, vector<2x32xf32>
    tpu.vector_store %arg16[%c8, %c0_41], %108 {strides = array<i32>} : memref<16x32xf32, #tpu.memory_space<vmem>>, vector<2x32xf32>,
    %111 = vector.extract_strided_slice %5 {offsets = [10, 0], sizes = [2, 32], strides = [1, 1]} : vector<16x32xf32> to vector<2x32xf32>
    %cst_42 = arith.constant dense<0.000000e+00> : vector<2x32xf32>
    %112 = tpu.matmul %109, %6, %cst_42 {dimension_numbers = #tpu.dot_dimension_numbers<[1], [0], [0], [1], [0, 0, 1, 1], [], []>} : vector<2x32xbf16>, vector<32x32xbf16>, vector<2x32xf32> -> vector<2x32xf32>
    %113 = arith.addf %111, %112 : vector<2x32xf32>
    %114 = vector.broadcast %7 : vector<1x32xf32> to vector<2x32xf32>
    %115 = arith.addf %113, %114 : vector<2x32xf32>
    %cst_43 = arith.constant 2.000000e+00 : f32
    %116 = vector.broadcast %cst_43 : f32 to vector<2x32xf32>
    %117 = arith.divf %106, %116 : vector<2x32xf32>
    %118 = arith.addf %117, %115 : vector<2x32xf32>
    %cst_44 = arith.constant 1.000000e+00 : f32
    %119 = vector.broadcast %cst_44 : f32 to vector<2x32xf32>
    %120 = arith.subf %118, %119 : vector<2x32xf32>
    %cst_45 = arith.constant 0.000000e+00 : f32
    %121 = vector.broadcast %cst_45 : f32 to vector<2x32xf32>
    %122 = arith.cmpf oge, %120, %121 : vector<2x32xf32>
    %123 = arith.extui %122 : vector<2x32xi1> to vector<2x32xi32>
    %124 = arith.sitofp %123 : vector<2x32xi32> to vector<2x32xf32>
    %cst_46 = arith.constant 1.000000e+00 : f32
    %125 = vector.broadcast %cst_46 : f32 to vector<2x32xf32>
    %126 = arith.subf %125, %124 : vector<2x32xf32>
    %127 = arith.mulf %118, %126 : vector<2x32xf32>
    %128 = vector.broadcast %8 : vector<1x32xf32> to vector<2x32xf32>
    %129 = arith.mulf %124, %128 : vector<2x32xf32>
    %130 = arith.truncf %129 : vector<2x32xf32> to vector<2x32xbf16>
    %c10 = arith.constant 10 : index
    %c0_47 = arith.constant 0 : index
    %131 = vector.load %arg16[%c10, %c0_47] : memref<16x32xf32, #tpu.memory_space<vmem>>, vector<2x32xf32>
    tpu.vector_store %arg16[%c10, %c0_47], %129 {strides = array<i32>} : memref<16x32xf32, #tpu.memory_space<vmem>>, vector<2x32xf32>,
    %132 = vector.extract_strided_slice %5 {offsets = [12, 0], sizes = [2, 32], strides = [1, 1]} : vector<16x32xf32> to vector<2x32xf32>
    %cst_48 = arith.constant dense<0.000000e+00> : vector<2x32xf32>
    %133 = tpu.matmul %130, %6, %cst_48 {dimension_numbers = #tpu.dot_dimension_numbers<[1], [0], [0], [1], [0, 0, 1, 1], [], []>} : vector<2x32xbf16>, vector<32x32xbf16>, vector<2x32xf32> -> vector<2x32xf32>
    %134 = arith.addf %132, %133 : vector<2x32xf32>
    %135 = vector.broadcast %7 : vector<1x32xf32> to vector<2x32xf32>
    %136 = arith.addf %134, %135 : vector<2x32xf32>
    %cst_49 = arith.constant 2.000000e+00 : f32
    %137 = vector.broadcast %cst_49 : f32 to vector<2x32xf32>
    %138 = arith.divf %127, %137 : vector<2x32xf32>
    %139 = arith.addf %138, %136 : vector<2x32xf32>
    %cst_50 = arith.constant 1.000000e+00 : f32
    %140 = vector.broadcast %cst_50 : f32 to vector<2x32xf32>
    %141 = arith.subf %139, %140 : vector<2x32xf32>
    %cst_51 = arith.constant 0.000000e+00 : f32
    %142 = vector.broadcast %cst_51 : f32 to vector<2x32xf32>
    %143 = arith.cmpf oge, %141, %142 : vector<2x32xf32>
    %144 = arith.extui %143 : vector<2x32xi1> to vector<2x32xi32>
    %145 = arith.sitofp %144 : vector<2x32xi32> to vector<2x32xf32>
    %cst_52 = arith.constant 1.000000e+00 : f32
    %146 = vector.broadcast %cst_52 : f32 to vector<2x32xf32>
    %147 = arith.subf %146, %145 : vector<2x32xf32>
    %148 = arith.mulf %139, %147 : vector<2x32xf32>
    %149 = vector.broadcast %8 : vector<1x32xf32> to vector<2x32xf32>
    %150 = arith.mulf %145, %149 : vector<2x32xf32>
    %151 = arith.truncf %150 : vector<2x32xf32> to vector<2x32xbf16>
    %c12 = arith.constant 12 : index
    %c0_53 = arith.constant 0 : index
    %152 = vector.load %arg16[%c12, %c0_53] : memref<16x32xf32, #tpu.memory_space<vmem>>, vector<2x32xf32>
    tpu.vector_store %arg16[%c12, %c0_53], %150 {strides = array<i32>} : memref<16x32xf32, #tpu.memory_space<vmem>>, vector<2x32xf32>,
    %153 = vector.extract_strided_slice %5 {offsets = [14, 0], sizes = [2, 32], strides = [1, 1]} : vector<16x32xf32> to vector<2x32xf32>
    %cst_54 = arith.constant dense<0.000000e+00> : vector<2x32xf32>
    %154 = tpu.matmul %151, %6, %cst_54 {dimension_numbers = #tpu.dot_dimension_numbers<[1], [0], [0], [1], [0, 0, 1, 1], [], []>} : vector<2x32xbf16>, vector<32x32xbf16>, vector<2x32xf32> -> vector<2x32xf32>
    %155 = arith.addf %153, %154 : vector<2x32xf32>
    %156 = vector.broadcast %7 : vector<1x32xf32> to vector<2x32xf32>
    %157 = arith.addf %155, %156 : vector<2x32xf32>
    %cst_55 = arith.constant 2.000000e+00 : f32
    %158 = vector.broadcast %cst_55 : f32 to vector<2x32xf32>
    %159 = arith.divf %148, %158 : vector<2x32xf32>
    %160 = arith.addf %159, %157 : vector<2x32xf32>
    %cst_56 = arith.constant 1.000000e+00 : f32
    %161 = vector.broadcast %cst_56 : f32 to vector<2x32xf32>
    %162 = arith.subf %160, %161 : vector<2x32xf32>
    %cst_57 = arith.constant 0.000000e+00 : f32
    %163 = vector.broadcast %cst_57 : f32 to vector<2x32xf32>
    %164 = arith.cmpf oge, %162, %163 : vector<2x32xf32>
    %165 = arith.extui %164 : vector<2x32xi1> to vector<2x32xi32>
    %166 = arith.sitofp %165 : vector<2x32xi32> to vector<2x32xf32>
    %167 = vector.broadcast %8 : vector<1x32xf32> to vector<2x32xf32>
    %168 = arith.mulf %166, %167 : vector<2x32xf32>
    %c14 = arith.constant 14 : index
    %c0_58 = arith.constant 0 : index
    %169 = vector.load %arg16[%c14, %c0_58] : memref<16x32xf32, #tpu.memory_space<vmem>>, vector<2x32xf32>
    tpu.vector_store %arg16[%c14, %c0_58], %168 {strides = array<i32>} : memref<16x32xf32, #tpu.memory_space<vmem>>, vector<2x32xf32>,
    %c0_59 = arith.constant 0 : index
    %c0_60 = arith.constant 0 : index
    %170 = vector.load %arg16[%c0_59, %c0_60] : memref<16x32xf32, #tpu.memory_space<vmem>>, vector<16x32xf32>
    %171 = arith.truncf %170 : vector<16x32xf32> to vector<16x32xbf16>
    %c0_61 = arith.constant 0 : index
    %c0_62 = arith.constant 0 : index
    %172 = vector.load %arg7[%c0_61, %c0_62] : memref<32x32xbf16, #tpu.memory_space<vmem>>, vector<32x32xbf16>
    %cst_63 = arith.constant dense<0.000000e+00> : vector<16x32xf32>
    %173 = tpu.matmul %171, %172, %cst_63 {dimension_numbers = #tpu.dot_dimension_numbers<[1], [0], [0], [1], [0, 0, 1, 1], [], []>} : vector<16x32xbf16>, vector<32x32xbf16>, vector<16x32xf32> -> vector<16x32xf32>
    %c0_64 = arith.constant 0 : index
    %c0_65 = arith.constant 0 : index
    %174 = vector.load %arg8[%c0_64, %c0_65] : memref<1x32xf32, #tpu.memory_space<vmem>>, vector<1x32xf32>
    %175 = vector.broadcast %174 : vector<1x32xf32> to vector<16x32xf32>
    %176 = arith.addf %173, %175 : vector<16x32xf32>
    %c0_66 = arith.constant 0 : index
    %c0_67 = arith.constant 0 : index
    %177 = vector.load %arg9[%c0_66, %c0_67] : memref<32x32xbf16, #tpu.memory_space<vmem>>, vector<32x32xbf16>
    %c0_68 = arith.constant 0 : index
    %c0_69 = arith.constant 0 : index
    %178 = vector.load %arg10[%c0_68, %c0_69] : memref<1x32xf32, #tpu.memory_space<vmem>>, vector<1x32xf32>
    %c0_70 = arith.constant 0 : index
    %c0_71 = arith.constant 0 : index
    %179 = vector.load %arg11[%c0_70, %c0_71] : memref<1x32xf32, #tpu.memory_space<vmem>>, vector<1x32xf32>
    %cst_72 = arith.constant 0.000000e+00 : f32
    %180 = vector.broadcast %cst_72 : f32 to vector<2x32xf32>
    %181 = vector.extract_strided_slice %176 {offsets = [0, 0], sizes = [2, 32], strides = [1, 1]} : vector<16x32xf32> to vector<2x32xf32>
    %cst_73 = arith.constant 2.000000e+00 : f32
    %182 = vector.broadcast %cst_73 : f32 to vector<2x32xf32>
    %183 = arith.divf %180, %182 : vector<2x32xf32>
    %184 = arith.addf %183, %181 : vector<2x32xf32>
    %cst_74 = arith.constant 1.000000e+00 : f32
    %185 = vector.broadcast %cst_74 : f32 to vector<2x32xf32>
    %186 = arith.subf %184, %185 : vector<2x32xf32>
    %cst_75 = arith.constant 0.000000e+00 : f32
    %187 = vector.broadcast %cst_75 : f32 to vector<2x32xf32>
    %188 = arith.cmpf oge, %186, %187 : vector<2x32xf32>
    %189 = arith.extui %188 : vector<2x32xi1> to vector<2x32xi32>
    %190 = arith.sitofp %189 : vector<2x32xi32> to vector<2x32xf32>
    %cst_76 = arith.constant 1.000000e+00 : f32
    %191 = vector.broadcast %cst_76 : f32 to vector<2x32xf32>
    %192 = arith.subf %191, %190 : vector<2x32xf32>
    %193 = arith.mulf %184, %192 : vector<2x32xf32>
    %194 = vector.broadcast %179 : vector<1x32xf32> to vector<2x32xf32>
    %195 = arith.mulf %190, %194 : vector<2x32xf32>
    %196 = arith.truncf %195 : vector<2x32xf32> to vector<2x32xbf16>
    %c0_77 = arith.constant 0 : index
    %c0_78 = arith.constant 0 : index
    %197 = vector.load %arg16[%c0_77, %c0_78] : memref<16x32xf32, #tpu.memory_space<vmem>>, vector<2x32xf32>
    tpu.vector_store %arg16[%c0_77, %c0_78], %195 {strides = array<i32>} : memref<16x32xf32, #tpu.memory_space<vmem>>, vector<2x32xf32>,
    %198 = vector.extract_strided_slice %176 {offsets = [2, 0], sizes = [2, 32], strides = [1, 1]} : vector<16x32xf32> to vector<2x32xf32>
    %cst_79 = arith.constant dense<0.000000e+00> : vector<2x32xf32>
    %199 = tpu.matmul %196, %177, %cst_79 {dimension_numbers = #tpu.dot_dimension_numbers<[1], [0], [0], [1], [0, 0, 1, 1], [], []>} : vector<2x32xbf16>, vector<32x32xbf16>, vector<2x32xf32> -> vector<2x32xf32>
    %200 = arith.addf %198, %199 : vector<2x32xf32>
    %201 = vector.broadcast %178 : vector<1x32xf32> to vector<2x32xf32>
    %202 = arith.addf %200, %201 : vector<2x32xf32>
    %cst_80 = arith.constant 2.000000e+00 : f32
    %203 = vector.broadcast %cst_80 : f32 to vector<2x32xf32>
    %204 = arith.divf %193, %203 : vector<2x32xf32>
    %205 = arith.addf %204, %202 : vector<2x32xf32>
    %cst_81 = arith.constant 1.000000e+00 : f32
    %206 = vector.broadcast %cst_81 : f32 to vector<2x32xf32>
    %207 = arith.subf %205, %206 : vector<2x32xf32>
    %cst_82 = arith.constant 0.000000e+00 : f32
    %208 = vector.broadcast %cst_82 : f32 to vector<2x32xf32>
    %209 = arith.cmpf oge, %207, %208 : vector<2x32xf32>
    %210 = arith.extui %209 : vector<2x32xi1> to vector<2x32xi32>
    %211 = arith.sitofp %210 : vector<2x32xi32> to vector<2x32xf32>
    %cst_83 = arith.constant 1.000000e+00 : f32
    %212 = vector.broadcast %cst_83 : f32 to vector<2x32xf32>
    %213 = arith.subf %212, %211 : vector<2x32xf32>
    %214 = arith.mulf %205, %213 : vector<2x32xf32>
    %215 = vector.broadcast %179 : vector<1x32xf32> to vector<2x32xf32>
    %216 = arith.mulf %211, %215 : vector<2x32xf32>
    %217 = arith.truncf %216 : vector<2x32xf32> to vector<2x32xbf16>
    %c2_84 = arith.constant 2 : index
    %c0_85 = arith.constant 0 : index
    %218 = vector.load %arg16[%c2_84, %c0_85] : memref<16x32xf32, #tpu.memory_space<vmem>>, vector<2x32xf32>
    tpu.vector_store %arg16[%c2_84, %c0_85], %216 {strides = array<i32>} : memref<16x32xf32, #tpu.memory_space<vmem>>, vector<2x32xf32>,
    %219 = vector.extract_strided_slice %176 {offsets = [4, 0], sizes = [2, 32], strides = [1, 1]} : vector<16x32xf32> to vector<2x32xf32>
    %cst_86 = arith.constant dense<0.000000e+00> : vector<2x32xf32>
    %220 = tpu.matmul %217, %177, %cst_86 {dimension_numbers = #tpu.dot_dimension_numbers<[1], [0], [0], [1], [0, 0, 1, 1], [], []>} : vector<2x32xbf16>, vector<32x32xbf16>, vector<2x32xf32> -> vector<2x32xf32>
    %221 = arith.addf %219, %220 : vector<2x32xf32>
    %222 = vector.broadcast %178 : vector<1x32xf32> to vector<2x32xf32>
    %223 = arith.addf %221, %222 : vector<2x32xf32>
    %cst_87 = arith.constant 2.000000e+00 : f32
    %224 = vector.broadcast %cst_87 : f32 to vector<2x32xf32>
    %225 = arith.divf %214, %224 : vector<2x32xf32>
    %226 = arith.addf %225, %223 : vector<2x32xf32>
    %cst_88 = arith.constant 1.000000e+00 : f32
    %227 = vector.broadcast %cst_88 : f32 to vector<2x32xf32>
    %228 = arith.subf %226, %227 : vector<2x32xf32>
    %cst_89 = arith.constant 0.000000e+00 : f32
    %229 = vector.broadcast %cst_89 : f32 to vector<2x32xf32>
    %230 = arith.cmpf oge, %228, %229 : vector<2x32xf32>
    %231 = arith.extui %230 : vector<2x32xi1> to vector<2x32xi32>
    %232 = arith.sitofp %231 : vector<2x32xi32> to vector<2x32xf32>
    %cst_90 = arith.constant 1.000000e+00 : f32
    %233 = vector.broadcast %cst_90 : f32 to vector<2x32xf32>
    %234 = arith.subf %233, %232 : vector<2x32xf32>
    %235 = arith.mulf %226, %234 : vector<2x32xf32>
    %236 = vector.broadcast %179 : vector<1x32xf32> to vector<2x32xf32>
    %237 = arith.mulf %232, %236 : vector<2x32xf32>
    %238 = arith.truncf %237 : vector<2x32xf32> to vector<2x32xbf16>
    %c4_91 = arith.constant 4 : index
    %c0_92 = arith.constant 0 : index
    %239 = vector.load %arg16[%c4_91, %c0_92] : memref<16x32xf32, #tpu.memory_space<vmem>>, vector<2x32xf32>
    tpu.vector_store %arg16[%c4_91, %c0_92], %237 {strides = array<i32>} : memref<16x32xf32, #tpu.memory_space<vmem>>, vector<2x32xf32>,
    %240 = vector.extract_strided_slice %176 {offsets = [6, 0], sizes = [2, 32], strides = [1, 1]} : vector<16x32xf32> to vector<2x32xf32>
    %cst_93 = arith.constant dense<0.000000e+00> : vector<2x32xf32>
    %241 = tpu.matmul %238, %177, %cst_93 {dimension_numbers = #tpu.dot_dimension_numbers<[1], [0], [0], [1], [0, 0, 1, 1], [], []>} : vector<2x32xbf16>, vector<32x32xbf16>, vector<2x32xf32> -> vector<2x32xf32>
    %242 = arith.addf %240, %241 : vector<2x32xf32>
    %243 = vector.broadcast %178 : vector<1x32xf32> to vector<2x32xf32>
    %244 = arith.addf %242, %243 : vector<2x32xf32>
    %cst_94 = arith.constant 2.000000e+00 : f32
    %245 = vector.broadcast %cst_94 : f32 to vector<2x32xf32>
    %246 = arith.divf %235, %245 : vector<2x32xf32>
    %247 = arith.addf %246, %244 : vector<2x32xf32>
    %cst_95 = arith.constant 1.000000e+00 : f32
    %248 = vector.broadcast %cst_95 : f32 to vector<2x32xf32>
    %249 = arith.subf %247, %248 : vector<2x32xf32>
    %cst_96 = arith.constant 0.000000e+00 : f32
    %250 = vector.broadcast %cst_96 : f32 to vector<2x32xf32>
    %251 = arith.cmpf oge, %249, %250 : vector<2x32xf32>
    %252 = arith.extui %251 : vector<2x32xi1> to vector<2x32xi32>
    %253 = arith.sitofp %252 : vector<2x32xi32> to vector<2x32xf32>
    %cst_97 = arith.constant 1.000000e+00 : f32
    %254 = vector.broadcast %cst_97 : f32 to vector<2x32xf32>
    %255 = arith.subf %254, %253 : vector<2x32xf32>
    %256 = arith.mulf %247, %255 : vector<2x32xf32>
    %257 = vector.broadcast %179 : vector<1x32xf32> to vector<2x32xf32>
    %258 = arith.mulf %253, %257 : vector<2x32xf32>
    %259 = arith.truncf %258 : vector<2x32xf32> to vector<2x32xbf16>
    %c6_98 = arith.constant 6 : index
    %c0_99 = arith.constant 0 : index
    %260 = vector.load %arg16[%c6_98, %c0_99] : memref<16x32xf32, #tpu.memory_space<vmem>>, vector<2x32xf32>
    tpu.vector_store %arg16[%c6_98, %c0_99], %258 {strides = array<i32>} : memref<16x32xf32, #tpu.memory_space<vmem>>, vector<2x32xf32>,
    %261 = vector.extract_strided_slice %176 {offsets = [8, 0], sizes = [2, 32], strides = [1, 1]} : vector<16x32xf32> to vector<2x32xf32>
    %cst_100 = arith.constant dense<0.000000e+00> : vector<2x32xf32>
    %262 = tpu.matmul %259, %177, %cst_100 {dimension_numbers = #tpu.dot_dimension_numbers<[1], [0], [0], [1], [0, 0, 1, 1], [], []>} : vector<2x32xbf16>, vector<32x32xbf16>, vector<2x32xf32> -> vector<2x32xf32>
    %263 = arith.addf %261, %262 : vector<2x32xf32>
    %264 = vector.broadcast %178 : vector<1x32xf32> to vector<2x32xf32>
    %265 = arith.addf %263, %264 : vector<2x32xf32>
    %cst_101 = arith.constant 2.000000e+00 : f32
    %266 = vector.broadcast %cst_101 : f32 to vector<2x32xf32>
    %267 = arith.divf %256, %266 : vector<2x32xf32>
    %268 = arith.addf %267, %265 : vector<2x32xf32>
    %cst_102 = arith.constant 1.000000e+00 : f32
    %269 = vector.broadcast %cst_102 : f32 to vector<2x32xf32>
    %270 = arith.subf %268, %269 : vector<2x32xf32>
    %cst_103 = arith.constant 0.000000e+00 : f32
    %271 = vector.broadcast %cst_103 : f32 to vector<2x32xf32>
    %272 = arith.cmpf oge, %270, %271 : vector<2x32xf32>
    %273 = arith.extui %272 : vector<2x32xi1> to vector<2x32xi32>
    %274 = arith.sitofp %273 : vector<2x32xi32> to vector<2x32xf32>
    %cst_104 = arith.constant 1.000000e+00 : f32
    %275 = vector.broadcast %cst_104 : f32 to vector<2x32xf32>
    %276 = arith.subf %275, %274 : vector<2x32xf32>
    %277 = arith.mulf %268, %276 : vector<2x32xf32>
    %278 = vector.broadcast %179 : vector<1x32xf32> to vector<2x32xf32>
    %279 = arith.mulf %274, %278 : vector<2x32xf32>
    %280 = arith.truncf %279 : vector<2x32xf32> to vector<2x32xbf16>
    %c8_105 = arith.constant 8 : index
    %c0_106 = arith.constant 0 : index
    %281 = vector.load %arg16[%c8_105, %c0_106] : memref<16x32xf32, #tpu.memory_space<vmem>>, vector<2x32xf32>
    tpu.vector_store %arg16[%c8_105, %c0_106], %279 {strides = array<i32>} : memref<16x32xf32, #tpu.memory_space<vmem>>, vector<2x32xf32>,
    %282 = vector.extract_strided_slice %176 {offsets = [10, 0], sizes = [2, 32], strides = [1, 1]} : vector<16x32xf32> to vector<2x32xf32>
    %cst_107 = arith.constant dense<0.000000e+00> : vector<2x32xf32>
    %283 = tpu.matmul %280, %177, %cst_107 {dimension_numbers = #tpu.dot_dimension_numbers<[1], [0], [0], [1], [0, 0, 1, 1], [], []>} : vector<2x32xbf16>, vector<32x32xbf16>, vector<2x32xf32> -> vector<2x32xf32>
    %284 = arith.addf %282, %283 : vector<2x32xf32>
    %285 = vector.broadcast %178 : vector<1x32xf32> to vector<2x32xf32>
    %286 = arith.addf %284, %285 : vector<2x32xf32>
    %cst_108 = arith.constant 2.000000e+00 : f32
    %287 = vector.broadcast %cst_108 : f32 to vector<2x32xf32>
    %288 = arith.divf %277, %287 : vector<2x32xf32>
    %289 = arith.addf %288, %286 : vector<2x32xf32>
    %cst_109 = arith.constant 1.000000e+00 : f32
    %290 = vector.broadcast %cst_109 : f32 to vector<2x32xf32>
    %291 = arith.subf %289, %290 : vector<2x32xf32>
    %cst_110 = arith.constant 0.000000e+00 : f32
    %292 = vector.broadcast %cst_110 : f32 to vector<2x32xf32>
    %293 = arith.cmpf oge, %291, %292 : vector<2x32xf32>
    %294 = arith.extui %293 : vector<2x32xi1> to vector<2x32xi32>
    %295 = arith.sitofp %294 : vector<2x32xi32> to vector<2x32xf32>
    %cst_111 = arith.constant 1.000000e+00 : f32
    %296 = vector.broadcast %cst_111 : f32 to vector<2x32xf32>
    %297 = arith.subf %296, %295 : vector<2x32xf32>
    %298 = arith.mulf %289, %297 : vector<2x32xf32>
    %299 = vector.broadcast %179 : vector<1x32xf32> to vector<2x32xf32>
    %300 = arith.mulf %295, %299 : vector<2x32xf32>
    %301 = arith.truncf %300 : vector<2x32xf32> to vector<2x32xbf16>
    %c10_112 = arith.constant 10 : index
    %c0_113 = arith.constant 0 : index
    %302 = vector.load %arg16[%c10_112, %c0_113] : memref<16x32xf32, #tpu.memory_space<vmem>>, vector<2x32xf32>
    tpu.vector_store %arg16[%c10_112, %c0_113], %300 {strides = array<i32>} : memref<16x32xf32, #tpu.memory_space<vmem>>, vector<2x32xf32>,
    %303 = vector.extract_strided_slice %176 {offsets = [12, 0], sizes = [2, 32], strides = [1, 1]} : vector<16x32xf32> to vector<2x32xf32>
    %cst_114 = arith.constant dense<0.000000e+00> : vector<2x32xf32>
    %304 = tpu.matmul %301, %177, %cst_114 {dimension_numbers = #tpu.dot_dimension_numbers<[1], [0], [0], [1], [0, 0, 1, 1], [], []>} : vector<2x32xbf16>, vector<32x32xbf16>, vector<2x32xf32> -> vector<2x32xf32>
    %305 = arith.addf %303, %304 : vector<2x32xf32>
    %306 = vector.broadcast %178 : vector<1x32xf32> to vector<2x32xf32>
    %307 = arith.addf %305, %306 : vector<2x32xf32>
    %cst_115 = arith.constant 2.000000e+00 : f32
    %308 = vector.broadcast %cst_115 : f32 to vector<2x32xf32>
    %309 = arith.divf %298, %308 : vector<2x32xf32>
    %310 = arith.addf %309, %307 : vector<2x32xf32>
    %cst_116 = arith.constant 1.000000e+00 : f32
    %311 = vector.broadcast %cst_116 : f32 to vector<2x32xf32>
    %312 = arith.subf %310, %311 : vector<2x32xf32>
    %cst_117 = arith.constant 0.000000e+00 : f32
    %313 = vector.broadcast %cst_117 : f32 to vector<2x32xf32>
    %314 = arith.cmpf oge, %312, %313 : vector<2x32xf32>
    %315 = arith.extui %314 : vector<2x32xi1> to vector<2x32xi32>
    %316 = arith.sitofp %315 : vector<2x32xi32> to vector<2x32xf32>
    %cst_118 = arith.constant 1.000000e+00 : f32
    %317 = vector.broadcast %cst_118 : f32 to vector<2x32xf32>
    %318 = arith.subf %317, %316 : vector<2x32xf32>
    %319 = arith.mulf %310, %318 : vector<2x32xf32>
    %320 = vector.broadcast %179 : vector<1x32xf32> to vector<2x32xf32>
    %321 = arith.mulf %316, %320 : vector<2x32xf32>
    %322 = arith.truncf %321 : vector<2x32xf32> to vector<2x32xbf16>
    %c12_119 = arith.constant 12 : index
    %c0_120 = arith.constant 0 : index
    %323 = vector.load %arg16[%c12_119, %c0_120] : memref<16x32xf32, #tpu.memory_space<vmem>>, vector<2x32xf32>
    tpu.vector_store %arg16[%c12_119, %c0_120], %321 {strides = array<i32>} : memref<16x32xf32, #tpu.memory_space<vmem>>, vector<2x32xf32>,
    %324 = vector.extract_strided_slice %176 {offsets = [14, 0], sizes = [2, 32], strides = [1, 1]} : vector<16x32xf32> to vector<2x32xf32>
    %cst_121 = arith.constant dense<0.000000e+00> : vector<2x32xf32>
    %325 = tpu.matmul %322, %177, %cst_121 {dimension_numbers = #tpu.dot_dimension_numbers<[1], [0], [0], [1], [0, 0, 1, 1], [], []>} : vector<2x32xbf16>, vector<32x32xbf16>, vector<2x32xf32> -> vector<2x32xf32>
    %326 = arith.addf %324, %325 : vector<2x32xf32>
    %327 = vector.broadcast %178 : vector<1x32xf32> to vector<2x32xf32>
    %328 = arith.addf %326, %327 : vector<2x32xf32>
    %cst_122 = arith.constant 2.000000e+00 : f32
    %329 = vector.broadcast %cst_122 : f32 to vector<2x32xf32>
    %330 = arith.divf %319, %329 : vector<2x32xf32>
    %331 = arith.addf %330, %328 : vector<2x32xf32>
    %cst_123 = arith.constant 1.000000e+00 : f32
    %332 = vector.broadcast %cst_123 : f32 to vector<2x32xf32>
    %333 = arith.subf %331, %332 : vector<2x32xf32>
    %cst_124 = arith.constant 0.000000e+00 : f32
    %334 = vector.broadcast %cst_124 : f32 to vector<2x32xf32>
    %335 = arith.cmpf oge, %333, %334 : vector<2x32xf32>
    %336 = arith.extui %335 : vector<2x32xi1> to vector<2x32xi32>
    %337 = arith.sitofp %336 : vector<2x32xi32> to vector<2x32xf32>
    %338 = vector.broadcast %179 : vector<1x32xf32> to vector<2x32xf32>
    %339 = arith.mulf %337, %338 : vector<2x32xf32>
    %c14_125 = arith.constant 14 : index
    %c0_126 = arith.constant 0 : index
    %340 = vector.load %arg16[%c14_125, %c0_126] : memref<16x32xf32, #tpu.memory_space<vmem>>, vector<2x32xf32>
    tpu.vector_store %arg16[%c14_125, %c0_126], %339 {strides = array<i32>} : memref<16x32xf32, #tpu.memory_space<vmem>>, vector<2x32xf32>,
    %c0_127 = arith.constant 0 : index
    %c0_128 = arith.constant 0 : index
    %341 = vector.load %arg16[%c0_127, %c0_128] : memref<16x32xf32, #tpu.memory_space<vmem>>, vector<16x32xf32>
    %342 = arith.truncf %341 : vector<16x32xf32> to vector<16x32xbf16>
    %c0_129 = arith.constant 0 : index
    %c0_130 = arith.constant 0 : index
    %343 = vector.load %arg12[%c0_129, %c0_130] : memref<32x10xbf16, #tpu.memory_space<vmem>>, vector<32x10xbf16>
    %cst_131 = arith.constant dense<0.000000e+00> : vector<16x10xf32>
    %344 = tpu.matmul %342, %343, %cst_131 {dimension_numbers = #tpu.dot_dimension_numbers<[1], [0], [0], [1], [0, 0, 1, 1], [], []>} : vector<16x32xbf16>, vector<32x10xbf16>, vector<16x10xf32> -> vector<16x10xf32>
    %c0_132 = arith.constant 0 : index
    %c0_133 = arith.constant 0 : index
    %345 = vector.load %arg13[%c0_132, %c0_133] : memref<1x10xf32, #tpu.memory_space<vmem>>, vector<1x10xf32>
    %346 = vector.broadcast %345 : vector<1x10xf32> to vector<16x10xf32>
    %347 = arith.addf %344, %346 : vector<16x10xf32>
    %c0_134 = arith.constant 0 : index
    %c0_135 = arith.constant 0 : index
    %348 = vector.load %arg15[%c0_134, %c0_135] : memref<16x10xf32, #tpu.memory_space<vmem>>, vector<16x10xf32>
    tpu.vector_store %arg15[%c0_134, %c0_135], %347 {strides = array<i32>} : memref<16x10xf32, #tpu.memory_space<vmem>>, vector<16x10xf32>,
    %cst_136 = arith.constant 0.000000e+00 : f32
    %349 = vector.broadcast %cst_136 : f32 to vector<2x10xf32>
    %350 = vector.extract_strided_slice %347 {offsets = [0, 0], sizes = [2, 10], strides = [1, 1]} : vector<16x10xf32> to vector<2x10xf32>
    %cst_137 = arith.constant 2.000000e+00 : f32
    %351 = vector.broadcast %cst_137 : f32 to vector<2x10xf32>
    %352 = arith.divf %349, %351 : vector<2x10xf32>
    %353 = arith.addf %352, %350 : vector<2x10xf32>
    %cst_138 = arith.constant 1.000000e+00 : f32
    %354 = vector.broadcast %cst_138 : f32 to vector<2x10xf32>
    %355 = arith.subf %353, %354 : vector<2x10xf32>
    %cst_139 = arith.constant 0.000000e+00 : f32
    %356 = vector.broadcast %cst_139 : f32 to vector<2x10xf32>
    %357 = arith.cmpf oge, %355, %356 : vector<2x10xf32>
    %358 = arith.extui %357 : vector<2x10xi1> to vector<2x10xi32>
    %359 = arith.sitofp %358 : vector<2x10xi32> to vector<2x10xf32>
    %cst_140 = arith.constant 1.000000e+00 : f32
    %360 = vector.broadcast %cst_140 : f32 to vector<2x10xf32>
    %361 = arith.subf %360, %359 : vector<2x10xf32>
    %362 = arith.mulf %353, %361 : vector<2x10xf32>
    %c0_141 = arith.constant 0 : index
    %c0_142 = arith.constant 0 : index
    %363 = vector.load %arg14[%c0_141, %c0_142] : memref<16x10xf32, #tpu.memory_space<vmem>>, vector<2x10xf32>
    tpu.vector_store %arg14[%c0_141, %c0_142], %359 {strides = array<i32>} : memref<16x10xf32, #tpu.memory_space<vmem>>, vector<2x10xf32>,
    %364 = vector.extract_strided_slice %347 {offsets = [2, 0], sizes = [2, 10], strides = [1, 1]} : vector<16x10xf32> to vector<2x10xf32>
    %cst_143 = arith.constant 2.000000e+00 : f32
    %365 = vector.broadcast %cst_143 : f32 to vector<2x10xf32>
    %366 = arith.divf %362, %365 : vector<2x10xf32>
    %367 = arith.addf %366, %364 : vector<2x10xf32>
    %cst_144 = arith.constant 1.000000e+00 : f32
    %368 = vector.broadcast %cst_144 : f32 to vector<2x10xf32>
    %369 = arith.subf %367, %368 : vector<2x10xf32>
    %cst_145 = arith.constant 0.000000e+00 : f32
    %370 = vector.broadcast %cst_145 : f32 to vector<2x10xf32>
    %371 = arith.cmpf oge, %369, %370 : vector<2x10xf32>
    %372 = arith.extui %371 : vector<2x10xi1> to vector<2x10xi32>
    %373 = arith.sitofp %372 : vector<2x10xi32> to vector<2x10xf32>
    %cst_146 = arith.constant 1.000000e+00 : f32
    %374 = vector.broadcast %cst_146 : f32 to vector<2x10xf32>
    %375 = arith.subf %374, %373 : vector<2x10xf32>
    %376 = arith.mulf %367, %375 : vector<2x10xf32>
    %c2_147 = arith.constant 2 : index
    %c0_148 = arith.constant 0 : index
    %377 = vector.load %arg14[%c2_147, %c0_148] : memref<16x10xf32, #tpu.memory_space<vmem>>, vector<2x10xf32>
    tpu.vector_store %arg14[%c2_147, %c0_148], %373 {strides = array<i32>} : memref<16x10xf32, #tpu.memory_space<vmem>>, vector<2x10xf32>,
    %378 = vector.extract_strided_slice %347 {offsets = [4, 0], sizes = [2, 10], strides = [1, 1]} : vector<16x10xf32> to vector<2x10xf32>
    %cst_149 = arith.constant 2.000000e+00 : f32
    %379 = vector.broadcast %cst_149 : f32 to vector<2x10xf32>
    %380 = arith.divf %376, %379 : vector<2x10xf32>
    %381 = arith.addf %380, %378 : vector<2x10xf32>
    %cst_150 = arith.constant 1.000000e+00 : f32
    %382 = vector.broadcast %cst_150 : f32 to vector<2x10xf32>
    %383 = arith.subf %381, %382 : vector<2x10xf32>
    %cst_151 = arith.constant 0.000000e+00 : f32
    %384 = vector.broadcast %cst_151 : f32 to vector<2x10xf32>
    %385 = arith.cmpf oge, %383, %384 : vector<2x10xf32>
    %386 = arith.extui %385 : vector<2x10xi1> to vector<2x10xi32>
    %387 = arith.sitofp %386 : vector<2x10xi32> to vector<2x10xf32>
    %cst_152 = arith.constant 1.000000e+00 : f32
    %388 = vector.broadcast %cst_152 : f32 to vector<2x10xf32>
    %389 = arith.subf %388, %387 : vector<2x10xf32>
    %390 = arith.mulf %381, %389 : vector<2x10xf32>
    %c4_153 = arith.constant 4 : index
    %c0_154 = arith.constant 0 : index
    %391 = vector.load %arg14[%c4_153, %c0_154] : memref<16x10xf32, #tpu.memory_space<vmem>>, vector<2x10xf32>
    tpu.vector_store %arg14[%c4_153, %c0_154], %387 {strides = array<i32>} : memref<16x10xf32, #tpu.memory_space<vmem>>, vector<2x10xf32>,
    %392 = vector.extract_strided_slice %347 {offsets = [6, 0], sizes = [2, 10], strides = [1, 1]} : vector<16x10xf32> to vector<2x10xf32>
    %cst_155 = arith.constant 2.000000e+00 : f32
    %393 = vector.broadcast %cst_155 : f32 to vector<2x10xf32>
    %394 = arith.divf %390, %393 : vector<2x10xf32>
    %395 = arith.addf %394, %392 : vector<2x10xf32>
    %cst_156 = arith.constant 1.000000e+00 : f32
    %396 = vector.broadcast %cst_156 : f32 to vector<2x10xf32>
    %397 = arith.subf %395, %396 : vector<2x10xf32>
    %cst_157 = arith.constant 0.000000e+00 : f32
    %398 = vector.broadcast %cst_157 : f32 to vector<2x10xf32>
    %399 = arith.cmpf oge, %397, %398 : vector<2x10xf32>
    %400 = arith.extui %399 : vector<2x10xi1> to vector<2x10xi32>
    %401 = arith.sitofp %400 : vector<2x10xi32> to vector<2x10xf32>
    %cst_158 = arith.constant 1.000000e+00 : f32
    %402 = vector.broadcast %cst_158 : f32 to vector<2x10xf32>
    %403 = arith.subf %402, %401 : vector<2x10xf32>
    %404 = arith.mulf %395, %403 : vector<2x10xf32>
    %c6_159 = arith.constant 6 : index
    %c0_160 = arith.constant 0 : index
    %405 = vector.load %arg14[%c6_159, %c0_160] : memref<16x10xf32, #tpu.memory_space<vmem>>, vector<2x10xf32>
    tpu.vector_store %arg14[%c6_159, %c0_160], %401 {strides = array<i32>} : memref<16x10xf32, #tpu.memory_space<vmem>>, vector<2x10xf32>,
    %406 = vector.extract_strided_slice %347 {offsets = [8, 0], sizes = [2, 10], strides = [1, 1]} : vector<16x10xf32> to vector<2x10xf32>
    %cst_161 = arith.constant 2.000000e+00 : f32
    %407 = vector.broadcast %cst_161 : f32 to vector<2x10xf32>
    %408 = arith.divf %404, %407 : vector<2x10xf32>
    %409 = arith.addf %408, %406 : vector<2x10xf32>
    %cst_162 = arith.constant 1.000000e+00 : f32
    %410 = vector.broadcast %cst_162 : f32 to vector<2x10xf32>
    %411 = arith.subf %409, %410 : vector<2x10xf32>
    %cst_163 = arith.constant 0.000000e+00 : f32
    %412 = vector.broadcast %cst_163 : f32 to vector<2x10xf32>
    %413 = arith.cmpf oge, %411, %412 : vector<2x10xf32>
    %414 = arith.extui %413 : vector<2x10xi1> to vector<2x10xi32>
    %415 = arith.sitofp %414 : vector<2x10xi32> to vector<2x10xf32>
    %cst_164 = arith.constant 1.000000e+00 : f32
    %416 = vector.broadcast %cst_164 : f32 to vector<2x10xf32>
    %417 = arith.subf %416, %415 : vector<2x10xf32>
    %418 = arith.mulf %409, %417 : vector<2x10xf32>
    %c8_165 = arith.constant 8 : index
    %c0_166 = arith.constant 0 : index
    %419 = vector.load %arg14[%c8_165, %c0_166] : memref<16x10xf32, #tpu.memory_space<vmem>>, vector<2x10xf32>
    tpu.vector_store %arg14[%c8_165, %c0_166], %415 {strides = array<i32>} : memref<16x10xf32, #tpu.memory_space<vmem>>, vector<2x10xf32>,
    %420 = vector.extract_strided_slice %347 {offsets = [10, 0], sizes = [2, 10], strides = [1, 1]} : vector<16x10xf32> to vector<2x10xf32>
    %cst_167 = arith.constant 2.000000e+00 : f32
    %421 = vector.broadcast %cst_167 : f32 to vector<2x10xf32>
    %422 = arith.divf %418, %421 : vector<2x10xf32>
    %423 = arith.addf %422, %420 : vector<2x10xf32>
    %cst_168 = arith.constant 1.000000e+00 : f32
    %424 = vector.broadcast %cst_168 : f32 to vector<2x10xf32>
    %425 = arith.subf %423, %424 : vector<2x10xf32>
    %cst_169 = arith.constant 0.000000e+00 : f32
    %426 = vector.broadcast %cst_169 : f32 to vector<2x10xf32>
    %427 = arith.cmpf oge, %425, %426 : vector<2x10xf32>
    %428 = arith.extui %427 : vector<2x10xi1> to vector<2x10xi32>
    %429 = arith.sitofp %428 : vector<2x10xi32> to vector<2x10xf32>
    %cst_170 = arith.constant 1.000000e+00 : f32
    %430 = vector.broadcast %cst_170 : f32 to vector<2x10xf32>
    %431 = arith.subf %430, %429 : vector<2x10xf32>
    %432 = arith.mulf %423, %431 : vector<2x10xf32>
    %c10_171 = arith.constant 10 : index
    %c0_172 = arith.constant 0 : index
    %433 = vector.load %arg14[%c10_171, %c0_172] : memref<16x10xf32, #tpu.memory_space<vmem>>, vector<2x10xf32>
    tpu.vector_store %arg14[%c10_171, %c0_172], %429 {strides = array<i32>} : memref<16x10xf32, #tpu.memory_space<vmem>>, vector<2x10xf32>,
    %434 = vector.extract_strided_slice %347 {offsets = [12, 0], sizes = [2, 10], strides = [1, 1]} : vector<16x10xf32> to vector<2x10xf32>
    %cst_173 = arith.constant 2.000000e+00 : f32
    %435 = vector.broadcast %cst_173 : f32 to vector<2x10xf32>
    %436 = arith.divf %432, %435 : vector<2x10xf32>
    %437 = arith.addf %436, %434 : vector<2x10xf32>
    %cst_174 = arith.constant 1.000000e+00 : f32
    %438 = vector.broadcast %cst_174 : f32 to vector<2x10xf32>
    %439 = arith.subf %437, %438 : vector<2x10xf32>
    %cst_175 = arith.constant 0.000000e+00 : f32
    %440 = vector.broadcast %cst_175 : f32 to vector<2x10xf32>
    %441 = arith.cmpf oge, %439, %440 : vector<2x10xf32>
    %442 = arith.extui %441 : vector<2x10xi1> to vector<2x10xi32>
    %443 = arith.sitofp %442 : vector<2x10xi32> to vector<2x10xf32>
    %cst_176 = arith.constant 1.000000e+00 : f32
    %444 = vector.broadcast %cst_176 : f32 to vector<2x10xf32>
    %445 = arith.subf %444, %443 : vector<2x10xf32>
    %446 = arith.mulf %437, %445 : vector<2x10xf32>
    %c12_177 = arith.constant 12 : index
    %c0_178 = arith.constant 0 : index
    %447 = vector.load %arg14[%c12_177, %c0_178] : memref<16x10xf32, #tpu.memory_space<vmem>>, vector<2x10xf32>
    tpu.vector_store %arg14[%c12_177, %c0_178], %443 {strides = array<i32>} : memref<16x10xf32, #tpu.memory_space<vmem>>, vector<2x10xf32>,
    %448 = vector.extract_strided_slice %347 {offsets = [14, 0], sizes = [2, 10], strides = [1, 1]} : vector<16x10xf32> to vector<2x10xf32>
    %cst_179 = arith.constant 2.000000e+00 : f32
    %449 = vector.broadcast %cst_179 : f32 to vector<2x10xf32>
    %450 = arith.divf %446, %449 : vector<2x10xf32>
    %451 = arith.addf %450, %448 : vector<2x10xf32>
    %cst_180 = arith.constant 1.000000e+00 : f32
    %452 = vector.broadcast %cst_180 : f32 to vector<2x10xf32>
    %453 = arith.subf %451, %452 : vector<2x10xf32>
    %cst_181 = arith.constant 0.000000e+00 : f32
    %454 = vector.broadcast %cst_181 : f32 to vector<2x10xf32>
    %455 = arith.cmpf oge, %453, %454 : vector<2x10xf32>
    %456 = arith.extui %455 : vector<2x10xi1> to vector<2x10xi32>
    %457 = arith.sitofp %456 : vector<2x10xi32> to vector<2x10xf32>
    %c14_182 = arith.constant 14 : index
    %c0_183 = arith.constant 0 : index
    %458 = vector.load %arg14[%c14_182, %c0_183] : memref<16x10xf32, #tpu.memory_space<vmem>>, vector<2x10xf32>
    tpu.vector_store %arg14[%c14_182, %c0_183], %457 {strides = array<i32>} : memref<16x10xf32, #tpu.memory_space<vmem>>, vector<2x10xf32>,
    return
  }
  func.func @transform_0(%arg0: i32) -> (i32, i32) {
    %c0_i32 = arith.constant 0 : i32
    %c0_i32_0 = arith.constant 0 : i32
    %c0_i32_1 = arith.constant 0 : i32
    return %c0_i32, %c0_i32_0 : i32, i32
  }
  func.func @transform_1(%arg0: i32) -> (i32, i32) {
    %c0_i32 = arith.constant 0 : i32
    %c0_i32_0 = arith.constant 0 : i32
    %c0_i32_1 = arith.constant 0 : i32
    return %c0_i32, %c0_i32_0 : i32, i32
  }
  func.func @transform_2(%arg0: i32) -> (i32, i32) {
    %c0_i32 = arith.constant 0 : i32
    %c0_i32_0 = arith.constant 0 : i32
    %c0_i32_1 = arith.constant 0 : i32
    return %c0_i32, %c0_i32_0 : i32, i32
  }
  func.func @transform_3(%arg0: i32) -> (i32, i32) {
    %c0_i32 = arith.constant 0 : i32
    %c0_i32_0 = arith.constant 0 : i32
    %c0_i32_1 = arith.constant 0 : i32
    return %c0_i32, %c0_i32_0 : i32, i32
  }
  func.func @transform_4(%arg0: i32) -> (i32, i32) {
    %c0_i32 = arith.constant 0 : i32
    %c0_i32_0 = arith.constant 0 : i32
    %c0_i32_1 = arith.constant 0 : i32
    return %c0_i32, %c0_i32_0 : i32, i32
  }
  func.func @transform_5(%arg0: i32) -> (i32, i32) {
    %c0_i32 = arith.constant 0 : i32
    %c0_i32_0 = arith.constant 0 : i32
    %c0_i32_1 = arith.constant 0 : i32
    return %c0_i32, %c0_i32_0 : i32, i32
  }
  func.func @transform_6(%arg0: i32) -> (i32, i32) {
    %c0_i32 = arith.constant 0 : i32
    %c0_i32_0 = arith.constant 0 : i32
    %c0_i32_1 = arith.constant 0 : i32
    return %c0_i32, %c0_i32_0 : i32, i32
  }
  func.func @transform_7(%arg0: i32) -> (i32, i32) {
    %c0_i32 = arith.constant 0 : i32
    %c0_i32_0 = arith.constant 0 : i32
    %c0_i32_1 = arith.constant 0 : i32
    return %c0_i32, %c0_i32_0 : i32, i32
  }
  func.func @transform_8(%arg0: i32) -> (i32, i32) {
    %c0_i32 = arith.constant 0 : i32
    %c0_i32_0 = arith.constant 0 : i32
    %c0_i32_1 = arith.constant 0 : i32
    return %c0_i32, %c0_i32_0 : i32, i32
  }
  func.func @transform_9(%arg0: i32) -> (i32, i32) {
    %c0_i32 = arith.constant 0 : i32
    %c0_i32_0 = arith.constant 0 : i32
    %c0_i32_1 = arith.constant 0 : i32
    return %c0_i32, %c0_i32_0 : i32, i32
  }
  func.func @transform_10(%arg0: i32) -> (i32, i32) {
    %c0_i32 = arith.constant 0 : i32
    %c0_i32_0 = arith.constant 0 : i32
    %c0_i32_1 = arith.constant 0 : i32
    return %c0_i32, %c0_i32_0 : i32, i32
  }
  func.func @transform_11(%arg0: i32) -> (i32, i32) {
    %c0_i32 = arith.constant 0 : i32
    %c0_i32_0 = arith.constant 0 : i32
    %c0_i32_1 = arith.constant 0 : i32
    return %c0_i32, %c0_i32_0 : i32, i32
  }
  func.func @transform_12(%arg0: i32) -> (i32, i32) {
    %c0_i32 = arith.constant 0 : i32
    %c0_i32_0 = arith.constant 0 : i32
    %c0_i32_1 = arith.constant 0 : i32
    return %c0_i32, %c0_i32_0 : i32, i32
  }
  func.func @transform_13(%arg0: i32) -> (i32, i32) {
    %c0_i32 = arith.constant 0 : i32
    %c0_i32_0 = arith.constant 0 : i32
    %c0_i32_1 = arith.constant 0 : i32
    return %c0_i32, %c0_i32_0 : i32, i32
  }
  func.func @transform_14(%arg0: i32) -> (i32, i32) {
    %c0_i32 = arith.constant 0 : i32
    %c0_i32_0 = arith.constant 0 : i32
    %c0_i32_1 = arith.constant 0 : i32
    return %c0_i32, %c0_i32_0 : i32, i32
  }
}

</mosaic_0001>

<bundles_post_ra>
// kernel: eidrsnn_forward.1
= control target key start
LH: loop header
LB: loop body
LE: loop exit
PB: predicated region body
PF: predicated region fallthrough
CT: control target
= control target key end

     0   :  { %v1572_v0 = vmov 0.0   ;;  %vm1573_vm0 = vmmov 0   ;;  %vm77_vm1 = vcmask 261120   ;;  %vm143_vm3 = vcmask 254976   ;;  %s1973_s1 = inlined_call_operand.vmem [shape: bf16[32,32], index: 1, kind: input, shape index: {}]   ;;  %s1974_s0 = inlined_call_operand.vmem [shape: bf16[16,32], index: 0, kind: input, shape index: {}]   ;;  %s1975_s3 = inlined_call_operand.vmem [shape: bf16[32,32], index: 3, kind: input, shape index: {}]   ;;  %s1976_s2 = inlined_call_operand.vmem [shape: f32[1,32], index: 2, kind: input, shape index: {}]   ;;  %s1977_s5 = inlined_call_operand.vmem [shape: f32[1,32], index: 5, kind: input, shape index: {}]   ;;  %s1978_s4 = inlined_call_operand.vmem [shape: f32[1,32], index: 4, kind: input, shape index: {}]   ;;  %s1979_s6 = inlined_call_operand.vmem [shape: bf16[32,32], index: 6, kind: input, shape index: {}]   ;;  %s1980_s8 = inlined_call_operand.vmem [shape: bf16[32,32], index: 8, kind: input, shape index: {}]   ;;  %s1981_s7 = inlined_call_operand.vmem [shape: f32[1,32], index: 7, kind: input, shape index: {}]   ;;  %s1982_s10 = inlined_call_operand.vmem [shape: f32[1,32], index: 10, kind: input, shape index: {}]   ;;  %s1983_s9 = inlined_call_operand.vmem [shape: f32[1,32], index: 9, kind: input, shape index: {}]   ;;  %s1984_s11 = inlined_call_operand.vmem [shape: bf16[32,10], index: 11, kind: input, shape index: {}]   ;;  %s1985_s12 = inlined_call_operand.vmem [shape: f32[1,10], index: 12, kind: input, shape index: {}]   ;;  %s1986_s14 = inlined_call_operand.vmem [shape: f32[16,10], index: 14, kind: output, shape index: {1}]   ;;  %s1987_s13 = inlined_call_operand.vmem [shape: f32[16,10], index: 13, kind: output, shape index: {0}]  }
   0x1   :  { %1423 = vmatprep.subr.bf16.mxu0 %v1572_v0  ;;  %v1561_v1 = vld [vmem:[%s1973_s1 + $0x8] sm:$0xff]   ;;  %1427 = vmatprep.mubr.msk.bf16.mxu0 %vm1573_vm0, %v1572_v0  ;;  %v1562_v2 = vld [vmem:[%s1973_s1] sm:$0xff]  }
   0x2   :  { %1431 = vmatprep.subr.bf16.mxu1 %v1572_v0  ;;  %1435 = vmatprep.mubr.msk.bf16.mxu1 %vm1573_vm0, %v1572_v0  ;;  %v1563_v3 = vld [vmem:[%s1974_s0] sm:$0xff]   ;;  %v1672_v4 = vld [vmem:[%s1975_s3 + $0x8] sm:$0xff]  }
   0x3   :  { %1424 = vmatpush3.bf16.msra.mxu0 %v1561_v1  ;;  %1432 = vmatpush3.bf16.msra.mxu1 %v1672_v4  ;;  %v1681_v5 = vld [vmem:[%s1975_s3] sm:$0xff]  }
   0x4   :  { %1425 = vmatprep.subr.bf16.mxu0 %v1572_v0  ;;  %1433 = vmatprep.subr.bf16.mxu1 %v1572_v0  ;;  %v1289_v6 = vld [vmem:[%s1976_s2] ss:$0 sm:$0xff] }
   0x5   :  { %v1696_v12 = vld [vmem:[%s1977_s5] ss:$0 sm:$0xff] }
   0x6   :  { %v1713_v21 = vld [vmem:[%s1978_s4] ss:$0 sm:$0xff] }
   0x7   :  { %1426 = vmatpush3.bf16.msra.mxu0 %v1562_v2  ;;  %1434 = vmatpush3.bf16.msra.mxu1 %v1681_v5 }
   0x8   :  { %1439 = vmatprep.subr.bf16.mxu0 %v1572_v0  ;;  %1447 = vmatprep.subr.bf16.mxu1 %v1572_v0 }
   0xa   :  { %1428 = vmatmul.mubr.msk.bf16.vlgmr.msra.gmra.mxu0 %vm77_vm1, %v1563_v3 }
   0xb   :  { %1443 = vmatprep.mubr.msk.bf16.mxu0 %vm1573_vm0, %v1572_v0  ;;  %1440 = vmatpush3.bf16.msra.mxu0 %v1672_v4 }
   0xc   :  { %1441 = vmatprep.subr.bf16.mxu0 %v1572_v0 }
   0xf   :  { %1442 = vmatpush3.bf16.msra.mxu0 %v1681_v5 }
  0x10   :  { %1455 = vmatprep.subr.bf16.mxu0 %v1572_v0 }
  0xca   :  { %v115_v7 = vpop.f32.mrf.mxu0 }
  0xcb   :  { %v1690_v8 = vadd.f32 %v1289_v6, %v115_v7 }
  0xcc   :  { %v1429_v9 = vpop.f32.mrf.mxu0 }
  0xcd   :  { %v1294_v10 = vadd.f32 -1.0, %v1690_v8 }
  0xce   :  { %v118_v11 = vpop.f32.mrf.mxu0 }
  0xcf   :  { %v1698_v13 = vadd.f32 %v1289_v6, %v118_v11  ;;  %vm130_vm2 = vcmp.ge.f32.partialorder %v1294_v10, 0.0 }
  0xd0   :  { %v1430_v14 = vpop.f32.mrf.mxu0  ;;  %v1295_v15 = vsel %vm130_vm2, 1.0, %v1572_v0 }
  0xd1   :  { %v141_v16 = vmul.f32 %v1696_v12, %v1295_v15  ;;  %v133_v18 = vsub.f32 1.0, %v1295_v15 }
  0xd3   :  { %v142_v17 = vpack.c.bf16 %v141_v16, %v141_v16  ;;  %144 = vst.msk [vmem:[#allocation2] sm:$0x3] %vm143_vm3, %v141_v16  ;;  %v134_v23 = vmul.f32 %v133_v18, %v1690_v8 }
  0xd5   :  { %1436 = vmatmul.mubr.msk.bf16.vlgmr.msra.gmra.mxu1 %vm77_vm1, %v142_v17  ;;  %v212_v28 = vmul.f32 0.5, %v134_v23 }
  0xd6   :  { %1448 = vmatpush3.bf16.msra.mxu1 %v1672_v4  ;;  %1451 = vmatprep.mubr.msk.bf16.mxu1 %vm1573_vm0, %v1572_v0 }
  0xd7   :  { %1449 = vmatprep.subr.bf16.mxu1 %v1572_v0 }
  0xda   :  { %1450 = vmatpush3.bf16.msra.mxu1 %v1681_v5 }
  0xdb   :  { %1463 = vmatprep.subr.bf16.mxu1 %v1572_v0 }
 0x195   :  { %v194_v19 = vpop.f32.mrf.mxu1 }
 0x196   :  { %v201_v20 = vrot.slane %v194_v19, 6 }
 0x197   :  { %v1437_v22 = vpop.f32.mrf.mxu1 }
 0x198   :  { %v203_v24 = vadd.f32 %v201_v20, %v1690_v8 }
 0x199   :  { %v197_v25 = vpop.f32.mrf.mxu1 }
 0x19a   :  { %v210_v26 = vadd.f32 %v1713_v21, %v203_v24 }
 0x19b   :  { %v1438_v27 = vpop.f32.mrf.mxu1 }
 0x19c   :  { %v214_v29 = vrot.slane %v210_v26, 2 }
 0x19e   :  { %v216_v30 = vadd.f32 %v214_v29, %v212_v28 }
 0x1a0   :  { %v1301_v31 = vadd.f32 -1.0, %v216_v30 }
 0x1a2   :  { %vm218_vm4 = vcmp.ge.f32.partialorder %v1301_v31, 0.0 }
 0x1a3   :  { %v1302_v32 = vsel %vm218_vm4, 1.0, %v1572_v0 }
 0x1a4   :  { %v221_v33 = vsub.f32 1.0, %v1302_v32  ;;  %v223_v34 = vmul.f32 %v1302_v32, %v1696_v12 }
 0x1a6   :  { %v222_v35 = vmul.f32 %v221_v33, %v216_v30  ;;  %225 = vst.msk [vmem:[#allocation2 + $0x2] sm:$0x3] %vm143_vm3, %v223_v34  ;;  %v224_v36 = vpack.c.bf16 %v223_v34, %v223_v34 }
 0x1a8   :  { %1444 = vmatmul.mubr.msk.bf16.vlgmr.msra.gmra.mxu0 %vm77_vm1, %v224_v36  ;;  %v274_v44 = vmul.f32 0.5, %v222_v35 }
 0x1a9   :  { %1456 = vmatpush3.bf16.msra.mxu0 %v1672_v4  ;;  %1459 = vmatprep.mubr.msk.bf16.mxu0 %vm1573_vm0, %v1572_v0 }
 0x1aa   :  { %1457 = vmatprep.subr.bf16.mxu0 %v1572_v0 }
 0x1ad   :  { %1458 = vmatpush3.bf16.msra.mxu0 %v1681_v5 }
 0x1ae   :  { %1471 = vmatprep.subr.bf16.mxu0 %v1572_v0 }
 0x268   :  { %v263_v37 = vpop.f32.mrf.mxu0 }
 0x269   :  { %v270_v38 = vrot.slane %v263_v37, 4 }
 0x26a   :  { %v1445_v39 = vpop.f32.mrf.mxu0 }
 0x26b   :  { %v272_v40 = vadd.f32 %v270_v38, %v1690_v8 }
 0x26c   :  { %v266_v41 = vpop.f32.mrf.mxu0 }
 0x26d   :  { %v273_v42 = vadd.f32 %v1713_v21, %v272_v40 }
 0x26e   :  { %v1446_v43 = vpop.f32.mrf.mxu0 }
 0x26f   :  { %v276_v45 = vrot.slane %v273_v42, 4 }
 0x271   :  { %v278_v46 = vadd.f32 %v276_v45, %v274_v44 }
 0x273   :  { %v1304_v47 = vadd.f32 -1.0, %v278_v46 }
 0x275   :  { %vm280_vm5 = vcmp.ge.f32.partialorder %v1304_v47, 0.0 }
 0x276   :  { %v1305_v48 = vsel %vm280_vm5, 1.0, %v1572_v0  ;;  %vm1194_vm5 = vcmask 80896  }
 0x277   :  { %v283_v49 = vsub.f32 1.0, %v1305_v48  ;;  %v285_v50 = vmul.f32 %v1305_v48, %v1696_v12 }
 0x279   :  { %v284_v51 = vmul.f32 %v283_v49, %v278_v46  ;;  %287 = vst.msk [vmem:[#allocation2 + $0x4] sm:$0x3] %vm143_vm3, %v285_v50  ;;  %v286_v52 = vpack.c.bf16 %v285_v50, %v285_v50 }
 0x27b   :  { %1452 = vmatmul.mubr.msk.bf16.vlgmr.msra.gmra.mxu1 %vm77_vm1, %v286_v52  ;;  %v336_v60 = vmul.f32 0.5, %v284_v51 }
 0x27c   :  { %1464 = vmatpush3.bf16.msra.mxu1 %v1672_v4  ;;  %1467 = vmatprep.mubr.msk.bf16.mxu1 %vm1573_vm0, %v1572_v0 }
 0x27d   :  { %1465 = vmatprep.subr.bf16.mxu1 %v1572_v0 }
 0x280   :  { %1466 = vmatpush3.bf16.msra.mxu1 %v1681_v5 }
 0x281   :  { %1479 = vmatprep.subr.bf16.mxu1 %v1572_v0 }
 0x33b   :  { %v325_v53 = vpop.f32.mrf.mxu1 }
 0x33c   :  { %v332_v54 = vrot.slane %v325_v53, 2 }
 0x33d   :  { %v1453_v55 = vpop.f32.mrf.mxu1 }
 0x33e   :  { %v334_v56 = vadd.f32 %v332_v54, %v1690_v8  ;;  %v1566_v55 = vld [vmem:[%s1979_s6 + $0x8] sm:$0xff]  }
 0x33f   :  { %v328_v57 = vpop.f32.mrf.mxu1 }
 0x340   :  { %v335_v58 = vadd.f32 %v1713_v21, %v334_v56  ;;  %v1567_v56 = vld [vmem:[%s1979_s6] sm:$0xff]  }
 0x341   :  { %v1454_v59 = vpop.f32.mrf.mxu1 }
 0x342   :  { %v338_v61 = vrot.slane %v335_v58, 6 }
 0x344   :  { %v340_v62 = vadd.f32 %v338_v61, %v336_v60 }
 0x346   :  { %v1307_v63 = vadd.f32 -1.0, %v340_v62 }
 0x348   :  { %vm342_vm6 = vcmp.ge.f32.partialorder %v1307_v63, 0.0 }
 0x349   :  { %v1308_v1 = vsel %vm342_vm6, 1.0, %v1572_v0  ;;  %vm1204_vm6 = vcmask 74752  }
 0x34a   :  { %v347_v2 = vmul.f32 %v1308_v1, %v1696_v12  ;;  %v345_v3 = vsub.f32 1.0, %v1308_v1 }
 0x34c   :  { %349 = vst.msk [vmem:[#allocation2 + $0x6] sm:$0x3] %vm143_vm3, %v347_v2  ;;  %v348_v6 = vpack.c.bf16 %v347_v2, %v347_v2  ;;  %v346_v7 = vmul.f32 %v345_v3, %v340_v62 }
 0x34e   :  { %1460 = vmatmul.mubr.msk.bf16.vlgmr.msra.gmra.mxu0 %vm77_vm1, %v348_v6  ;;  %v395_v14 = vmul.f32 0.5, %v346_v7 }
 0x34f   :  { %1472 = vmatpush3.bf16.msra.mxu0 %v1672_v4  ;;  %1475 = vmatprep.mubr.msk.bf16.mxu0 %vm1573_vm0, %v1572_v0 }
 0x350   :  { %1473 = vmatprep.subr.bf16.mxu0 %v1572_v0 }
 0x353   :  { %1474 = vmatpush3.bf16.msra.mxu0 %v1681_v5 }
 0x354   :  { %1487 = vmatprep.subr.bf16.mxu0 %v1572_v0 }
 0x40e   :  { %v387_v8 = vpop.f32.mrf.mxu0 }
 0x40f   :  { %v393_v9 = vadd.f32 %v387_v8, %v1698_v13 }
 0x410   :  { %v1461_v10 = vpop.f32.mrf.mxu0 }
 0x411   :  { %v394_v11 = vadd.f32 %v1713_v21, %v393_v9  ;;  %v589_v9 = vld [vmem:[#allocation2] sm:$0xff] }
 0x412   :  { %v390_v15 = vpop.f32.mrf.mxu0 }
 0x413   :  { %v396_v16 = vadd.f32 %v395_v14, %v394_v11 }
 0x414   :  { %v1462_v17 = vpop.f32.mrf.mxu0 }
 0x415   :  { %v1310_v18 = vadd.f32 -1.0, %v396_v16 }
 0x417   :  { %vm398_vm7 = vcmp.ge.f32.partialorder %v1310_v18, 0.0 }
 0x418   :  { %v1311_v19 = vsel %vm398_vm7, 1.0, %v1572_v0 }
 0x419   :  { %v401_v20 = vsub.f32 1.0, %v1311_v19  ;;  %v403_v22 = vmul.f32 %v1311_v19, %v1696_v12  ;;  %v1823_v19 = vld [vmem:[%s1982_s10] ss:$0 sm:$0xff] }
 0x41b   :  { %v402_v23 = vmul.f32 %v401_v20, %v396_v16  ;;  %v404_v24 = vpack.c.bf16 %v403_v22, %v403_v22  ;;  %405 = vst.msk [vmem:[#allocation2 + $0x8] sm:$0x3] %vm143_vm3, %v403_v22 }
 0x41d   :  { %1468 = vmatmul.mubr.msk.bf16.vlgmr.msra.gmra.mxu1 %vm77_vm1, %v404_v24  ;;  %v454_v32 = vmul.f32 0.5, %v402_v23 }
 0x41e   :  { %1480 = vmatpush3.bf16.msra.mxu1 %v1672_v4  ;;  %1483 = vmatprep.mubr.msk.bf16.mxu1 %vm1573_vm0, %v1572_v0 }
 0x41f   :  { %1481 = vmatprep.subr.bf16.mxu1 %v1572_v0 }
 0x422   :  { %1482 = vmatpush3.bf16.msra.mxu1 %v1681_v5 }
 0x423   :  { %1495 = vmatprep.subr.bf16.mxu1 %v1572_v0 }
 0x4dd   :  { %v443_v25 = vpop.f32.mrf.mxu1 }
 0x4de   :  { %v450_v26 = vrot.slane %v443_v25, 6 }
 0x4df   :  { %v1469_v27 = vpop.f32.mrf.mxu1 }
 0x4e0   :  { %v452_v28 = vadd.f32 %v450_v26, %v1698_v13 }
 0x4e1   :  { %v446_v29 = vpop.f32.mrf.mxu1 }
 0x4e2   :  { %v453_v30 = vadd.f32 %v1713_v21, %v452_v28  ;;  %v1840_v29 = vld [vmem:[%s1983_s9] ss:$0 sm:$0xff] }
 0x4e3   :  { %v1470_v31 = vpop.f32.mrf.mxu1 }
 0x4e4   :  { %v456_v4 = vrot.slane %v453_v30, 2 }
 0x4e6   :  { %v458_v33 = vadd.f32 %v456_v4, %v454_v32 }
 0x4e8   :  { %v1313_v34 = vadd.f32 -1.0, %v458_v33 }
 0x4ea   :  { %vm460_vm8 = vcmp.ge.f32.partialorder %v1313_v34, 0.0 }
 0x4eb   :  { %v1314_v35 = vsel %vm460_vm8, 1.0, %v1572_v0 }
 0x4ec   :  { %v463_v36 = vsub.f32 1.0, %v1314_v35  ;;  %v465_v5 = vmul.f32 %v1314_v35, %v1696_v12 }
 0x4ee   :  { %v464_v37 = vmul.f32 %v463_v36, %v458_v33  ;;  %467 = vst.msk [vmem:[#allocation2 + $0xa] sm:$0x3] %vm143_vm3, %v465_v5  ;;  %v466_v38 = vpack.c.bf16 %v465_v5, %v465_v5 }
 0x4f0   :  { %1476 = vmatmul.mubr.msk.bf16.vlgmr.msra.gmra.mxu0 %vm77_vm1, %v466_v38  ;;  %v516_v46 = vmul.f32 0.5, %v464_v37 }
 0x4f1   :  { %1491 = vmatprep.mubr.msk.bf16.mxu0 %vm1573_vm0, %v1572_v0  ;;  %1488 = vmatpush3.bf16.msra.mxu0 %v1566_v55 }
 0x4f2   :  { %1489 = vmatprep.subr.bf16.mxu0 %v1572_v0 }
 0x4f5   :  { %1490 = vmatpush3.bf16.msra.mxu0 %v1567_v56 }
 0x4f6   :  { %1503 = vmatprep.subr.bf16.mxu0 %v1572_v0 }
 0x5b0   :  { %v505_v39 = vpop.f32.mrf.mxu0 }
 0x5b1   :  { %v512_v40 = vrot.slane %v505_v39, 4 }
 0x5b2   :  { %v1477_v41 = vpop.f32.mrf.mxu0 }
 0x5b3   :  { %v514_v42 = vadd.f32 %v512_v40, %v1698_v13 }
 0x5b4   :  { %v508_v43 = vpop.f32.mrf.mxu0 }
 0x5b5   :  { %v515_v44 = vadd.f32 %v1713_v21, %v514_v42 }
 0x5b6   :  { %v1478_v45 = vpop.f32.mrf.mxu0 }
 0x5b7   :  { %v518_v47 = vrot.slane %v515_v44, 4 }
 0x5b9   :  { %v520_v48 = vadd.f32 %v518_v47, %v516_v46 }
 0x5bb   :  { %v1316_v49 = vadd.f32 -1.0, %v520_v48 }
 0x5bd   :  { %vm522_vm9 = vcmp.ge.f32.partialorder %v1316_v49, 0.0 }
 0x5be   :  { %v1317_v50 = vsel %vm522_vm9, 1.0, %v1572_v0 }
 0x5bf   :  { %v525_v51 = vsub.f32 1.0, %v1317_v50  ;;  %v527_v52 = vmul.f32 %v1317_v50, %v1696_v12 }
 0x5c1   :  { %v526_v53 = vmul.f32 %v525_v51, %v520_v48  ;;  %529 = vst.msk [vmem:[#allocation2 + $0xc] sm:$0x3] %vm143_vm3, %v527_v52  ;;  %v528_v54 = vpack.c.bf16 %v527_v52, %v527_v52 }
 0x5c3   :  { %1484 = vmatmul.mubr.msk.bf16.vlgmr.msra.gmra.mxu1 %vm77_vm1, %v528_v54  ;;  %v578_v1 = vmul.f32 0.5, %v526_v53 }
 0x5c4   :  { %1499 = vmatprep.mubr.msk.bf16.mxu1 %vm1573_vm0, %v1572_v0 }
 0x683   :  { %v567_v57 = vpop.f32.mrf.mxu1 }
 0x684   :  { %v574_v58 = vrot.slane %v567_v57, 2 }
 0x685   :  { %v1485_v59 = vpop.f32.mrf.mxu1 }
 0x686   :  { %v576_v60 = vadd.f32 %v574_v58, %v1698_v13  ;;  %v1799_v13 = vld [vmem:[%s1980_s8 + $0x8] sm:$0xff]  }
 0x687   :  { %v570_v61 = vpop.f32.mrf.mxu1  ;;  %1496 = vmatpush3.bf16.msra.mxu1 %v1799_v13 }
 0x688   :  { %v577_v62 = vadd.f32 %v1713_v21, %v576_v60  ;;  %1497 = vmatprep.subr.bf16.mxu1 %v1572_v0  ;;  %v1321_v21 = vld [vmem:[%s1981_s7] ss:$0 sm:$0xff] }
 0x689   :  { %v1486_v63 = vpop.f32.mrf.mxu1 }
 0x68a   :  { %v580_v2 = vrot.slane %v577_v62, 6 }
 0x68c   :  { %v582_v3 = vadd.f32 %v580_v2, %v578_v1 }
 0x68e   :  { %v1319_v6 = vadd.f32 -1.0, %v582_v3 }
 0x690   :  { %vm584_vm10 = vcmp.ge.f32.partialorder %v1319_v6, 0.0 }
 0x691   :  { %v1320_v7 = vsel %vm584_vm10, 1.0, %v1572_v0 }
 0x692   :  { %v587_v8 = vmul.f32 %v1320_v7, %v1696_v12  ;;  %v1808_v12 = vld [vmem:[%s1980_s8] sm:$0xff]  }
 0x693   :  { %1498 = vmatpush3.bf16.msra.mxu1 %v1808_v12 }
 0x694   :  { %588 = vst.msk [vmem:[#allocation2 + $0xe] sm:$0x3] %vm143_vm3, %v587_v8  ;;  %1511 = vmatprep.subr.bf16.mxu1 %v1572_v0 }
 0x69b   :  { %v590_v10 = vld [vmem:[#allocation2 + $0x8] sm:$0xff] }
 0x69c   :  { %v591_v11 = vpack.c.bf16 %v590_v10, %v589_v9 }
 0x69e   :  { %1492 = vmatmul.mubr.msk.bf16.vlgmr.msra.gmra.mxu0 %vm77_vm1, %v591_v11 }
 0x69f   :  { %1507 = vmatprep.mubr.msk.bf16.mxu0 %vm1573_vm0, %v1572_v0  ;;  %1504 = vmatpush3.bf16.msra.mxu0 %v1799_v13 }
 0x6a0   :  { %1505 = vmatprep.subr.bf16.mxu0 %v1572_v0 }
 0x6a3   :  { %1506 = vmatpush3.bf16.msra.mxu0 %v1808_v12 }
 0x6a4   :  { %1519 = vmatprep.subr.bf16.mxu0 %v1572_v0 }
 0x75e   :  { %v652_v14 = vpop.f32.mrf.mxu0 }
 0x75f   :  { %v1817_v15 = vadd.f32 %v1321_v21, %v652_v14 }
 0x760   :  { %v1493_v16 = vpop.f32.mrf.mxu0 }
 0x761   :  { %v1325_v17 = vadd.f32 -1.0, %v1817_v15 }
 0x762   :  { %v655_v18 = vpop.f32.mrf.mxu0 }
 0x763   :  { %vm667_vm11 = vcmp.ge.f32.partialorder %v1325_v17, 0.0  ;;  %v1825_v20 = vadd.f32 %v1321_v21, %v655_v18 }
 0x764   :  { %v1326_v22 = vsel %vm667_vm11, 1.0, %v1572_v0  ;;  %v1494_v23 = vpop.f32.mrf.mxu0 }
 0x765   :  { %v678_v24 = vmul.f32 %v1823_v19, %v1326_v22  ;;  %v670_v26 = vsub.f32 1.0, %v1326_v22 }
 0x767   :  { %v679_v25 = vpack.c.bf16 %v678_v24, %v678_v24  ;;  %680 = vst.msk [vmem:[#allocation2] sm:$0x3] %vm143_vm3, %v678_v24  ;;  %v671_v31 = vmul.f32 %v670_v26, %v1817_v15 }
 0x769   :  { %1500 = vmatmul.mubr.msk.bf16.vlgmr.msra.gmra.mxu1 %vm77_vm1, %v679_v25  ;;  %v747_v35 = vmul.f32 0.5, %v671_v31 }
 0x76a   :  { %1512 = vmatpush3.bf16.msra.mxu1 %v1799_v13  ;;  %1515 = vmatprep.mubr.msk.bf16.mxu1 %vm1573_vm0, %v1572_v0 }
 0x76b   :  { %1513 = vmatprep.subr.bf16.mxu1 %v1572_v0 }
 0x76e   :  { %1514 = vmatpush3.bf16.msra.mxu1 %v1808_v12 }
 0x76f   :  { %1527 = vmatprep.subr.bf16.mxu1 %v1572_v0 }
 0x829   :  { %v730_v27 = vpop.f32.mrf.mxu1 }
 0x82a   :  { %v737_v28 = vrot.slane %v730_v27, 6 }
 0x82b   :  { %v1501_v30 = vpop.f32.mrf.mxu1 }
 0x82c   :  { %v739_v32 = vadd.f32 %v737_v28, %v1817_v15 }
 0x82d   :  { %v733_v4 = vpop.f32.mrf.mxu1 }
 0x82e   :  { %v746_v33 = vadd.f32 %v1840_v29, %v739_v32 }
 0x82f   :  { %v1502_v34 = vpop.f32.mrf.mxu1 }
 0x830   :  { %v749_v36 = vrot.slane %v746_v33, 2 }
 0x832   :  { %v751_v5 = vadd.f32 %v749_v36, %v747_v35 }
 0x834   :  { %v1332_v37 = vadd.f32 -1.0, %v751_v5 }
 0x836   :  { %vm753_vm12 = vcmp.ge.f32.partialorder %v1332_v37, 0.0 }
 0x837   :  { %v1333_v38 = vsel %vm753_vm12, 1.0, %v1572_v0 }
 0x838   :  { %v756_v39 = vsub.f32 1.0, %v1333_v38  ;;  %v758_v40 = vmul.f32 %v1333_v38, %v1823_v19 }
 0x83a   :  { %v757_v41 = vmul.f32 %v756_v39, %v751_v5  ;;  %760 = vst.msk [vmem:[#allocation2 + $0x2] sm:$0x3] %vm143_vm3, %v758_v40  ;;  %v759_v42 = vpack.c.bf16 %v758_v40, %v758_v40 }
 0x83c   :  { %1508 = vmatmul.mubr.msk.bf16.vlgmr.msra.gmra.mxu0 %vm77_vm1, %v759_v42  ;;  %v809_v50 = vmul.f32 0.5, %v757_v41 }
 0x83d   :  { %1520 = vmatpush3.bf16.msra.mxu0 %v1799_v13  ;;  %1523 = vmatprep.mubr.msk.bf16.mxu0 %vm1573_vm0, %v1572_v0 }
 0x83e   :  { %1521 = vmatprep.subr.bf16.mxu0 %v1572_v0 }
 0x841   :  { %1522 = vmatpush3.bf16.msra.mxu0 %v1808_v12 }
 0x842   :  { %1535 = vmatprep.subr.bf16.mxu0 %v1572_v0 }
 0x8fc   :  { %v798_v43 = vpop.f32.mrf.mxu0 }
 0x8fd   :  { %v805_v44 = vrot.slane %v798_v43, 4 }
 0x8fe   :  { %v1509_v45 = vpop.f32.mrf.mxu0 }
 0x8ff   :  { %v807_v46 = vadd.f32 %v805_v44, %v1817_v15 }
 0x900   :  { %v801_v47 = vpop.f32.mrf.mxu0 }
 0x901   :  { %v808_v48 = vadd.f32 %v1840_v29, %v807_v46 }
 0x902   :  { %v1510_v49 = vpop.f32.mrf.mxu0 }
 0x903   :  { %v811_v51 = vrot.slane %v808_v48, 4 }
 0x905   :  { %v813_v52 = vadd.f32 %v811_v51, %v809_v50 }
 0x907   :  { %v1335_v53 = vadd.f32 -1.0, %v813_v52 }
 0x909   :  { %vm815_vm13 = vcmp.ge.f32.partialorder %v1335_v53, 0.0 }
 0x90a   :  { %v1336_v54 = vsel %vm815_vm13, 1.0, %v1572_v0 }
 0x90b   :  { %v818_v55 = vsub.f32 1.0, %v1336_v54  ;;  %v820_v56 = vmul.f32 %v1336_v54, %v1823_v19 }
 0x90d   :  { %v819_v57 = vmul.f32 %v818_v55, %v813_v52  ;;  %822 = vst.msk [vmem:[#allocation2 + $0x4] sm:$0x3] %vm143_vm3, %v820_v56  ;;  %v821_v58 = vpack.c.bf16 %v820_v56, %v820_v56 }
 0x90f   :  { %1516 = vmatmul.mubr.msk.bf16.vlgmr.msra.gmra.mxu1 %vm77_vm1, %v821_v58  ;;  %v871_v3 = vmul.f32 0.5, %v819_v57 }
 0x910   :  { %1528 = vmatpush3.bf16.msra.mxu1 %v1799_v13  ;;  %1531 = vmatprep.mubr.msk.bf16.mxu1 %vm1573_vm0, %v1572_v0 }
 0x911   :  { %1529 = vmatprep.subr.bf16.mxu1 %v1572_v0 }
 0x914   :  { %1530 = vmatpush3.bf16.msra.mxu1 %v1808_v12 }
 0x915   :  { %1543 = vmatprep.subr.bf16.mxu1 %v1572_v0 }
 0x9cf   :  { %v860_v59 = vpop.f32.mrf.mxu1 }
 0x9d0   :  { %v867_v60 = vrot.slane %v860_v59, 2 }
 0x9d1   :  { %v1517_v61 = vpop.f32.mrf.mxu1 }
 0x9d2   :  { %v869_v62 = vadd.f32 %v867_v60, %v1817_v15  ;;  %v1570_v61 = vld [vmem:[%s1984_s11 + $0x8] sm:$0xff]  }
 0x9d3   :  { %v863_v63 = vpop.f32.mrf.mxu1 }
 0x9d4   :  { %v870_v1 = vadd.f32 %v1840_v29, %v869_v62  ;;  %v1571_v62 = vld [vmem:[%s1984_s11] sm:$0xff]  }
 0x9d5   :  { %v1518_v2 = vpop.f32.mrf.mxu1 }
 0x9d6   :  { %v873_v6 = vrot.slane %v870_v1, 6 }
 0x9d8   :  { %v875_v7 = vadd.f32 %v873_v6, %v871_v3 }
 0x9da   :  { %v1338_v8 = vadd.f32 -1.0, %v875_v7 }
 0x9dc   :  { %vm877_vm14 = vcmp.ge.f32.partialorder %v1338_v8, 0.0 }
 0x9dd   :  { %v1339_v9 = vsel %vm877_vm14, 1.0, %v1572_v0 }
 0x9de   :  { %v882_v10 = vmul.f32 %v1339_v9, %v1823_v19  ;;  %v880_v11 = vsub.f32 1.0, %v1339_v9 }
 0x9e0   :  { %884 = vst.msk [vmem:[#allocation2 + $0x6] sm:$0x3] %vm143_vm3, %v882_v10  ;;  %v883_v21 = vpack.c.bf16 %v882_v10, %v882_v10  ;;  %v881_v14 = vmul.f32 %v880_v11, %v875_v7 }
 0x9e2   :  { %1524 = vmatmul.mubr.msk.bf16.vlgmr.msra.gmra.mxu0 %vm77_vm1, %v883_v21  ;;  %v930_v22 = vmul.f32 0.5, %v881_v14 }
 0x9e3   :  { %1536 = vmatpush3.bf16.msra.mxu0 %v1799_v13  ;;  %1539 = vmatprep.mubr.msk.bf16.mxu0 %vm1573_vm0, %v1572_v0 }
 0x9e4   :  { %1537 = vmatprep.subr.bf16.mxu0 %v1572_v0 }
 0x9e7   :  { %1538 = vmatpush3.bf16.msra.mxu0 %v1808_v12 }
 0x9e8   :  { %1551 = vmatprep.subr.bf16.mxu0 %v1572_v0 }
 0xaa2   :  { %v922_v15 = vpop.f32.mrf.mxu0 }
 0xaa3   :  { %v928_v16 = vadd.f32 %v922_v15, %v1825_v20 }
 0xaa4   :  { %v1525_v17 = vpop.f32.mrf.mxu0 }
 0xaa5   :  { %v929_v18 = vadd.f32 %v1840_v29, %v928_v16  ;;  %v1124_v16 = vld [vmem:[#allocation2] sm:$0xff] }
 0xaa6   :  { %v925_v23 = vpop.f32.mrf.mxu0 }
 0xaa7   :  { %v931_v24 = vadd.f32 %v930_v22, %v929_v18 }
 0xaa8   :  { %v1526_v25 = vpop.f32.mrf.mxu0 }
 0xaa9   :  { %v1341_v26 = vadd.f32 -1.0, %v931_v24 }
 0xaab   :  { %vm933_vm15 = vcmp.ge.f32.partialorder %v1341_v26, 0.0 }
 0xaac   :  { %v1342_v27 = vsel %vm933_vm15, 1.0, %v1572_v0 }
 0xaad   :  { %v936_v28 = vsub.f32 1.0, %v1342_v27  ;;  %v938_v30 = vmul.f32 %v1342_v27, %v1823_v19 }
 0xaaf   :  { %v937_v31 = vmul.f32 %v936_v28, %v931_v24  ;;  %v939_v32 = vpack.c.bf16 %v938_v30, %v938_v30  ;;  %940 = vst.msk [vmem:[#allocation2 + $0x8] sm:$0x3] %vm143_vm3, %v938_v30 }
 0xab1   :  { %1532 = vmatmul.mubr.msk.bf16.vlgmr.msra.gmra.mxu1 %vm77_vm1, %v939_v32  ;;  %v989_v38 = vmul.f32 0.5, %v937_v31 }
 0xab2   :  { %1544 = vmatpush3.bf16.msra.mxu1 %v1799_v13  ;;  %1547 = vmatprep.mubr.msk.bf16.mxu1 %vm1573_vm0, %v1572_v0 }
 0xab3   :  { %1545 = vmatprep.subr.bf16.mxu1 %v1572_v0 }
 0xab6   :  { %1546 = vmatpush3.bf16.msra.mxu1 %v1808_v12 }
 0xb71   :  { %v978_v4 = vpop.f32.mrf.mxu1 }
 0xb72   :  { %v985_v33 = vrot.slane %v978_v4, 6 }
 0xb73   :  { %v1533_v34 = vpop.f32.mrf.mxu1 }
 0xb74   :  { %v987_v35 = vadd.f32 %v985_v33, %v1825_v20 }
 0xb75   :  { %v981_v36 = vpop.f32.mrf.mxu1 }
 0xb76   :  { %v988_v5 = vadd.f32 %v1840_v29, %v987_v35 }
 0xb77   :  { %v1534_v37 = vpop.f32.mrf.mxu1 }
 0xb78   :  { %v991_v39 = vrot.slane %v988_v5, 2 }
 0xb7a   :  { %v993_v40 = vadd.f32 %v991_v39, %v989_v38 }
 0xb7c   :  { %v1344_v13 = vadd.f32 -1.0, %v993_v40 }
 0xb7e   :  { %vm995_vm2 = vcmp.ge.f32.partialorder %v1344_v13, 0.0 }
 0xb7f   :  { %v1345_v41 = vsel %vm995_vm2, 1.0, %v1572_v0 }
 0xb80   :  { %v998_v42 = vsub.f32 1.0, %v1345_v41  ;;  %v1000_v43 = vmul.f32 %v1345_v41, %v1823_v19 }
 0xb82   :  { %v999_v12 = vmul.f32 %v998_v42, %v993_v40  ;;  %1002 = vst.msk [vmem:[#allocation2 + $0xa] sm:$0x3] %vm143_vm3, %v1000_v43  ;;  %v1001_v44 = vpack.c.bf16 %v1000_v43, %v1000_v43 }
 0xb84   :  { %1540 = vmatmul.mubr.msk.bf16.vlgmr.msra.gmra.mxu0 %vm77_vm1, %v1001_v44  ;;  %v1051_v52 = vmul.f32 0.5, %v999_v12 }
 0xb85   :  { %1555 = vmatprep.mubr.msk.bf16.mxu0 %vm1573_vm0, %v1572_v0  ;;  %1552 = vmatpush3.bf16.msra.mxu0 %v1570_v61 }
 0xb86   :  { %1553 = vmatprep.subr.bf16.mxu0 %v1572_v0 }
 0xb89   :  { %1554 = vmatpush3.bf16.msra.mxu0 %v1571_v62 }
 0xc44   :  { %v1040_v45 = vpop.f32.mrf.mxu0 }
 0xc45   :  { %v1047_v46 = vrot.slane %v1040_v45, 4 }
 0xc46   :  { %v1541_v47 = vpop.f32.mrf.mxu0 }
 0xc47   :  { %v1049_v48 = vadd.f32 %v1047_v46, %v1825_v20 }
 0xc48   :  { %v1043_v49 = vpop.f32.mrf.mxu0 }
 0xc49   :  { %v1050_v50 = vadd.f32 %v1840_v29, %v1049_v48 }
 0xc4a   :  { %v1542_v51 = vpop.f32.mrf.mxu0 }
 0xc4b   :  { %v1053_v53 = vrot.slane %v1050_v50, 4 }
 0xc4d   :  { %v1055_v54 = vadd.f32 %v1053_v53, %v1051_v52 }
 0xc4f   :  { %v1347_v55 = vadd.f32 -1.0, %v1055_v54 }
 0xc51   :  { %vm1057_vm4 = vcmp.ge.f32.partialorder %v1347_v55, 0.0 }
 0xc52   :  { %v1348_v56 = vsel %vm1057_vm4, 1.0, %v1572_v0 }
 0xc53   :  { %v1060_v57 = vsub.f32 1.0, %v1348_v56  ;;  %v1062_v58 = vmul.f32 %v1348_v56, %v1823_v19 }
 0xc55   :  { %v1061_v59 = vmul.f32 %v1060_v57, %v1055_v54  ;;  %1064 = vst.msk [vmem:[#allocation2 + $0xc] sm:$0x3] %vm143_vm3, %v1062_v58  ;;  %v1063_v60 = vpack.c.bf16 %v1062_v58, %v1062_v58 }
 0xc57   :  { %1548 = vmatmul.mubr.msk.bf16.vlgmr.msra.gmra.mxu1 %vm77_vm1, %v1063_v60  ;;  %v1113_v9 = vmul.f32 0.5, %v1061_v59 }
 0xd17   :  { %v1102_v63 = vpop.f32.mrf.mxu1 }
 0xd18   :  { %v1109_v1 = vrot.slane %v1102_v63, 2 }
 0xd19   :  { %v1549_v2 = vpop.f32.mrf.mxu1 }
 0xd1a   :  { %v1111_v3 = vadd.f32 %v1109_v1, %v1825_v20  ;;  %v1352_v20 = vld [vmem:[%s1985_s12] ss:$0 sm:$0xff] }
 0xd1b   :  { %v1105_v6 = vpop.f32.mrf.mxu1 }
 0xd1c   :  { %v1112_v7 = vadd.f32 %v1840_v29, %v1111_v3 }
 0xd1d   :  { %v1550_v8 = vpop.f32.mrf.mxu1 }
 0xd1e   :  { %v1115_v10 = vrot.slane %v1112_v7, 6 }
 0xd20   :  { %v1117_v11 = vadd.f32 %v1115_v10, %v1113_v9 }
 0xd22   :  { %v1350_v21 = vadd.f32 -1.0, %v1117_v11 }
 0xd24   :  { %vm1119_vm0 = vcmp.ge.f32.partialorder %v1350_v21, 0.0 }
 0xd25   :  { %v1351_v14 = vsel %vm1119_vm0, 1.0, %v1572_v0 }
 0xd26   :  { %v1122_v15 = vmul.f32 %v1351_v14, %v1823_v19 }
 0xd28   :  { %1123 = vst.msk [vmem:[#allocation2 + $0xe] sm:$0x3] %vm143_vm3, %v1122_v15 }
 0xd2f   :  { %v1125_v17 = vld [vmem:[#allocation2 + $0x8] sm:$0xff] }
 0xd30   :  { %v1126_v18 = vpack.c.bf16 %v1125_v17, %v1124_v16 }
 0xd32   :  { %1556 = vmatmul.mubr.msk.bf16.vlgmr.msra.gmra.mxu0 %vm77_vm1, %v1126_v18 }
 0xdf2   :  { %v1187_v29 = vpop.f32.mrf.mxu0 }
 0xdf3   :  { %v1188_v22 = vadd.f32 %v1352_v20, %v1187_v29 }
 0xdf4   :  { %v1557_v23 = vpop.f32.mrf.mxu0 }
 0xdf5   :  { %v1356_v24 = vadd.f32 -1.0, %v1188_v22  ;;  %1195 = vst.msk [vmem:[%s1986_s14] sm:$0xff] %vm1194_vm5, %v1188_v22  ;;  %v1208_v32 = vrot.slane %v1188_v22, 2  ;;  %v1219_v37 = vrot.slane %v1188_v22, 4  ;;  %v1230_v42 = vrot.slane %v1188_v22, 6 }
 0xdf6   :  { %v1190_v19 = vpop.f32.mrf.mxu0 }
 0xdf7   :  { %vm1199_vm3 = vcmp.ge.f32.partialorder %v1356_v24, 0.0  ;;  %v1923_v25 = vadd.f32 %v1352_v20, %v1190_v19 }
 0xdf8   :  { %v1357_v26 = vsel %vm1199_vm3, 1.0, %v1572_v0  ;;  %v1558_v27 = vpop.f32.mrf.mxu0 }
 0xdf9   :  { %v1202_v28 = vsub.f32 1.0, %v1357_v26  ;;  %1205 = vst.msk [vmem:[%s1987_s13] sm:$0x3] %vm1204_vm6, %v1357_v26  ;;  %v1251_v55 = vrot.slane %v1923_v25, 2  ;;  %v1262_v62 = vrot.slane %v1923_v25, 4  ;;  %v1273_v8 = vrot.slane %v1923_v25, 6 }
 0xdfa   :  { %1196 = vst.msk [vmem:[%s1986_s14 + $0x8] sm:$0xff] %vm1194_vm5, %v1923_v25 }
 0xdfb   :  { %v1203_v30 = vmul.f32 %v1202_v28, %v1188_v22 }
 0xdfd   :  { %v1206_v31 = vmul.f32 0.5, %v1203_v30 }
 0xdff   :  { %v1210_v4 = vadd.f32 %v1208_v32, %v1206_v31 }
 0xe01   :  { %v1358_v33 = vadd.f32 -1.0, %v1210_v4 }
 0xe03   :  { %vm1212_vm1 = vcmp.ge.f32.partialorder %v1358_v33, 0.0 }
 0xe04   :  { %v1359_v34 = vsel %vm1212_vm1, 1.0, %v1572_v0 }
 0xe05   :  { %v1215_v35 = vsub.f32 1.0, %v1359_v34  ;;  %1217 = vst.msk [vmem:[%s1987_s13 + $0x2] sm:$0x3] %vm1204_vm6, %v1359_v34 }
 0xe07   :  { %v1216_v36 = vmul.f32 %v1215_v35, %v1210_v4 }
 0xe09   :  { %v1218_v5 = vmul.f32 0.5, %v1216_v36 }
 0xe0b   :  { %v1221_v38 = vadd.f32 %v1219_v37, %v1218_v5 }
 0xe0d   :  { %v1360_v39 = vadd.f32 -1.0, %v1221_v38 }
 0xe0f   :  { %vm1223_vm7 = vcmp.ge.f32.partialorder %v1360_v39, 0.0 }
 0xe10   :  { %v1361_v40 = vsel %vm1223_vm7, 1.0, %v1572_v0 }
 0xe11   :  { %v1226_v13 = vsub.f32 1.0, %v1361_v40  ;;  %1228 = vst.msk [vmem:[%s1987_s13 + $0x4] sm:$0x3] %vm1204_vm6, %v1361_v40 }
 0xe13   :  { %v1227_v41 = vmul.f32 %v1226_v13, %v1221_v38 }
 0xe15   :  { %v1229_v43 = vmul.f32 0.5, %v1227_v41 }
 0xe17   :  { %v1232_v12 = vadd.f32 %v1230_v42, %v1229_v43 }
 0xe19   :  { %v1362_v44 = vadd.f32 -1.0, %v1232_v12 }
 0xe1b   :  { %vm1234_vm8 = vcmp.ge.f32.partialorder %v1362_v44, 0.0 }
 0xe1c   :  { %v1363_v45 = vsel %vm1234_vm8, 1.0, %v1572_v0 }
 0xe1d   :  { %v1237_v46 = vsub.f32 1.0, %v1363_v45  ;;  %1239 = vst.msk [vmem:[%s1987_s13 + $0x6] sm:$0x3] %vm1204_vm6, %v1363_v45 }
 0xe1f   :  { %v1238_v47 = vmul.f32 %v1237_v46, %v1232_v12 }
 0xe21   :  { %v1240_v48 = vmul.f32 0.5, %v1238_v47 }
 0xe23   :  { %v1241_v49 = vadd.f32 %v1240_v48, %v1923_v25 }
 0xe25   :  { %v1364_v50 = vadd.f32 -1.0, %v1241_v49 }
 0xe27   :  { %vm1243_vm9 = vcmp.ge.f32.partialorder %v1364_v50, 0.0 }
 0xe28   :  { %v1365_v51 = vsel %vm1243_vm9, 1.0, %v1572_v0 }
 0xe29   :  { %v1246_v52 = vsub.f32 1.0, %v1365_v51  ;;  %1248 = vst.msk [vmem:[%s1987_s13 + $0x8] sm:$0x3] %vm1204_vm6, %v1365_v51 }
 0xe2b   :  { %v1247_v53 = vmul.f32 %v1246_v52, %v1241_v49 }
 0xe2d   :  { %v1249_v54 = vmul.f32 0.5, %v1247_v53 }
 0xe2f   :  { %v1253_v56 = vadd.f32 %v1251_v55, %v1249_v54 }
 0xe31   :  { %v1366_v57 = vadd.f32 -1.0, %v1253_v56 }
 0xe33   :  { %vm1255_vm10 = vcmp.ge.f32.partialorder %v1366_v57, 0.0 }
 0xe34   :  { %v1367_v58 = vsel %vm1255_vm10, 1.0, %v1572_v0 }
 0xe35   :  { %v1258_v59 = vsub.f32 1.0, %v1367_v58  ;;  %1260 = vst.msk [vmem:[%s1987_s13 + $0xa] sm:$0x3] %vm1204_vm6, %v1367_v58 }
 0xe37   :  { %v1259_v60 = vmul.f32 %v1258_v59, %v1253_v56 }
 0xe39   :  { %v1261_v61 = vmul.f32 0.5, %v1259_v60 }
 0xe3b   :  { %v1264_v63 = vadd.f32 %v1262_v62, %v1261_v61 }
 0xe3d   :  { %v1368_v1 = vadd.f32 -1.0, %v1264_v63 }
 0xe3f   :  { %vm1266_vm11 = vcmp.ge.f32.partialorder %v1368_v1, 0.0 }
 0xe40   :  { %v1369_v2 = vsel %vm1266_vm11, 1.0, %v1572_v0 }
 0xe41   :  { %v1269_v3 = vsub.f32 1.0, %v1369_v2  ;;  %1271 = vst.msk [vmem:[%s1987_s13 + $0xc] sm:$0x3] %vm1204_vm6, %v1369_v2 }
 0xe43   :  { %v1270_v6 = vmul.f32 %v1269_v3, %v1264_v63 }
 0xe45   :  { %v1272_v7 = vmul.f32 0.5, %v1270_v6 }
 0xe47   :  { %v1275_v9 = vadd.f32 %v1273_v8, %v1272_v7 }
 0xe49   :  { %v1370_v10 = vadd.f32 -1.0, %v1275_v9 }
 0xe4b   :  { %vm1277_vm12 = vcmp.ge.f32.partialorder %v1370_v10, 0.0 }
 0xe4c   :  { %v1371_v11 = vsel %vm1277_vm12, 1.0, %v1572_v0 }
 0xe4d   :  { %1280 = vst.msk [vmem:[%s1987_s13 + $0xe] sm:$0x3] %vm1204_vm6, %v1371_v11 }

</bundles_post_ra>
